<compile_context>
chip_gen: v7x
topology: tpu7x:2x2x1
jax: 0.10.0
libtpu: 0.0.40
codegen_flags: <defaults>
</compile_context>

<pallas_src>
import functools
import math

import jax
import jax.numpy as jnp
from jax.experimental import pallas as pl
from jax.experimental.pallas import tpu as pltpu


LANE = 128
MXU_DTYPE = jnp.bfloat16   # jnp.float32 for bitwise-closer parity with the reference


# ---------------------------------------------------------------------------
# Fused forward kernel. Everything (ids, embeddings, weights, activations) is
# VMEM-resident; layer/head loops are static Python loops unrolled at trace
# time (tiny at this config).
# ---------------------------------------------------------------------------
def _fused_forward_kernel(tok_ref, lab_ref, tok_emb_ref, lab_emb_ref,
                          wqkv_ref, wmlp_ref, bmlp_ref, wcls_ref, bcls_ref,
                          o_ref, *, batch, seq, num_heads, d_head, scaled, mxu_dtype):
    B, P = batch, seq
    V, D = tok_emb_ref.shape
    IH = num_heads * d_head
    n_att = wqkv_ref.shape[0]
    n_mlp = wmlp_ref.shape[0]

    # ---- fused embedding lookup: exact one-hot gather on the MXU (kept f32 so
    #      the embedded activations are bit-exact vs. a table gather) ----------
    vocab_iota = jax.lax.broadcasted_iota(jnp.int32, (B * P, V), 1)
    tok_oh = (tok_ref[...] == vocab_iota).astype(jnp.float32)        # (B*P, V)
    lab_oh = (lab_ref[...] == vocab_iota).astype(jnp.float32)        # (B*P, V)
    x2 = (jnp.dot(tok_oh, tok_emb_ref[...], preferred_element_type=jnp.float32)
          + jnp.dot(lab_oh, lab_emb_ref[...], preferred_element_type=jnp.float32))
    x = x2.reshape(B, P, D)                       # leading-dim split: layout-free

    # ---- causal mask, built once at (1,P,P); broadcasts over batch ----------
    row = jax.lax.broadcasted_iota(jnp.int32, (P, P), 0)   # query index q
    col = jax.lax.broadcasted_iota(jnp.int32, (P, P), 1)   # key index p
    causal = (col <= row)[None, :, :]
    # Reference: tril(s) - 1e10*(1-mask), THEN optional /sqrt(d_head).  So when
    # scaled, the -1e10 fill is also scaled (~ -3.5e9); exp still underflows to
    # 0, hence a single where with pre-scaled constants is exactly equivalent.
    inv_sqrt_dh = float(1.0 / math.sqrt(d_head))
    neg_big = jnp.float32(-1e10 * (inv_sqrt_dh if scaled else 1.0))

    # ---- attention stack with residual: x = atten(x) + x --------------------
    for l in range(n_att):
        xf = x.reshape(B * P, D).astype(mxu_dtype)
        # One packed QKV matmul per layer, columns [Q heads | K heads | V heads]
        qkv = jnp.dot(xf, wqkv_ref[l], preferred_element_type=jnp.float32)
        qkv = qkv.reshape(B, P, 3 * IH)

        heads = []
        for i in range(num_heads):                 # static unroll, H=4
            q = qkv[:, :, i * d_head:(i + 1) * d_head].astype(mxu_dtype)
            k = qkv[:, :, IH + i * d_head:IH + (i + 1) * d_head].astype(mxu_dtype)
            v = qkv[:, :, 2 * IH + i * d_head:2 * IH + (i + 1) * d_head].astype(mxu_dtype)

            # scores[b,q,p] = sum_h q[b,q,h] k[b,p,h]   (single-batch-dim einsum)
            s = jnp.einsum('bqh,bph->bqp', q, k,
                           preferred_element_type=jnp.float32)       # (B,P,P) f32
            if scaled:
                s = s * inv_sqrt_dh
            s = jnp.where(causal, s, neg_big)      # mask + (scaled) fill, one select

            m = jnp.max(s, axis=-1, keepdims=True)
            e = jnp.exp(s - m)
            denom = jnp.sum(e, axis=-1, keepdims=True)
            # approx=True -> EUP vrcp (free slot); approx=False for exact divide
            attn = e * pl.reciprocal(denom, approx=True)
            z = jnp.einsum('bqp,bph->bqh', attn.astype(mxu_dtype), v,
                           preferred_element_type=jnp.float32)        # (B,P,dh)
            heads.append(z)

        x = jnp.concatenate(heads, axis=-1) + x    # residual add (f32)

    # ---- MLP stack (Linear + ReLU) on the flattened (B*P, D) view ------------
    h = x.reshape(B * P, D)
    for l in range(n_mlp):
        h = jnp.dot(h.astype(mxu_dtype), wmlp_ref[l],
                    preferred_element_type=jnp.float32) + bmlp_ref[l]
        h = jnp.maximum(h, 0.0)

    # ---- classifier (output padded to 128 lanes -> unmasked full vst) --------
    logits = jnp.dot(h.astype(mxu_dtype), wcls_ref[...],
                     preferred_element_type=jnp.float32) + bcls_ref[...]
    o_ref[...] = logits.astype(o_ref.dtype)


# ---------------------------------------------------------------------------
# One-time host-side weight packing (hoisted out of the forward path).
# ---------------------------------------------------------------------------
def pack_params(params, mxu_dtype=MXU_DTYPE):
    num_heads, d_head, d = params["atten"][0][0].shape
    ih = num_heads * d_head

    # attention: (I, H, D) x3 per layer  ->  (L_att, D, 3*I*H) packed [Q|K|V], bf16
    packed_qkv = []
    for wk, wq, wv in params["atten"]:
        wq_p = wq.reshape(ih, d).T
        wk_p = wk.reshape(ih, d).T
        wv_p = wv.reshape(ih, d).T
        packed_qkv.append(jnp.concatenate([wq_p, wk_p, wv_p], axis=1))
    wqkv = jnp.stack(packed_qkv, axis=0).astype(mxu_dtype)

    # MLP: nn.Linear (Dout, Din) -> (Din, Dout) bf16; bias -> (1, Dout) f32
    wmlp = jnp.stack([w.T for (w, _) in params["mlp"]], axis=0).astype(mxu_dtype)
    bmlp = jnp.stack([b.reshape(1, -1) for (_, b) in params["mlp"]],
                     axis=0).astype(jnp.float32)

    # classifier: transpose + lane-pad to a multiple of 128
    w_cls, b_cls = params["classifier"]
    d_vocab = w_cls.shape[0]
    vpad = ((d_vocab + LANE - 1) // LANE) * LANE
    wcls = jnp.zeros((d, vpad), mxu_dtype).at[:, :d_vocab].set(w_cls.T.astype(mxu_dtype))
    bcls = jnp.zeros((1, vpad), jnp.float32).at[:, :d_vocab].set(b_cls)

    return dict(
        tok_emb=params["tok_emb"].astype(jnp.float32),
        label_emb=params["label_emb"].astype(jnp.float32),
        wqkv=wqkv, wmlp=wmlp, bmlp=bmlp, wcls=wcls, bcls=bcls,
        num_heads=num_heads, d_head=d_head, d_emb=d, d_vocab=d_vocab, vpad=vpad,
    )


# ---------------------------------------------------------------------------
# Full TransformerICL forward (seq_model='Attention').
# ---------------------------------------------------------------------------
def transformer_icl_forward(packed, tokens, labels, *, use_scaled_attention=False):
    B, P = tokens.shape
    D = packed["d_emb"]
    H, dh = packed["num_heads"], packed["d_head"]
    IH = H * dh
    V = packed["tok_emb"].shape[0]
    vpad, d_vocab = packed["vpad"], packed["d_vocab"]
    n_att = packed["wqkv"].shape[0]
    n_mlp = packed["wmlp"].shape[0]
    mxu_dtype = packed["wqkv"].dtype

    # ids reshaped host-side to (B*P, 1) so the kernel never does a lane<->sublane
    # reshape on the index arrays (cheap: 16 int32s).
    tok = tokens.reshape(B * P, 1).astype(jnp.int32)
    lab = labels.reshape(B * P, 1).astype(jnp.int32)

    operands = (tok, lab, packed["tok_emb"], packed["label_emb"],
                packed["wqkv"], packed["wmlp"], packed["bmlp"],
                packed["wcls"], packed["bcls"])

    # VMEM limit sized from actual resident bytes (+ generous headroom).
    out_bytes = B * P * vpad * 4
    resident = sum(int(a.size) * a.dtype.itemsize for a in operands) + out_bytes
    vmem_limit = int(min(100 * 1024 * 1024, 2 * resident + (16 << 20)))

    flops = (2 * (2 * B * P * V * D)                 # one-hot embedding gathers
             + n_att * (2 * B * P * D * 3 * IH)      # packed QKV projections
             + n_att * H * (4 * B * P * P * dh)      # scores + attn@V
             + n_mlp * (2 * B * P * D * D)           # MLP
             + 2 * B * P * D * vpad)                 # classifier
    cost = pl.CostEstimate(flops=flops,
                           transcendentals=n_att * H * B * P * P,   # softmax exp
                           bytes_accessed=resident)

    kernel = functools.partial(
        _fused_forward_kernel, batch=B, seq=P, num_heads=H, d_head=dh,
        scaled=use_scaled_attention, mxu_dtype=mxu_dtype)

    vmem = pltpu.MemorySpace.VMEM
    out = pl.pallas_call(
        kernel,
        out_shape=jax.ShapeDtypeStruct((B * P, vpad), jnp.float32),
        in_specs=[pl.BlockSpec(memory_space=vmem)] * len(operands),
        out_specs=pl.BlockSpec(memory_space=vmem),
        compiler_params=pltpu.CompilerParams(vmem_limit_bytes=vmem_limit),
        cost_estimate=cost,
    )(*operands)

    return out.reshape(B, P, vpad)[:, :, :d_vocab]


# ---------------------------------------------------------------------------
# Deterministic parameter construction (matching the module's __init__ shapes).
# ---------------------------------------------------------------------------
def make_params(key, *, d_emb, num_heads, n_ctx, d_vocab,
                num_atten_layer, num_layers):
    del n_ctx  # causal mask is built on-the-fly in the kernel
    d_head = d_emb // num_heads
    keys = jax.random.split(key, 4 + 3 * num_atten_layer + 2 * num_layers + 2)
    it = iter(keys)

    tok_emb = jax.random.normal(next(it), (d_vocab, d_emb), jnp.float32) * 0.5
    label_emb = jax.random.normal(next(it), (d_vocab, d_emb), jnp.float32) * 0.5

    atten = []
    for _ in range(num_atten_layer):
        wk = jax.random.normal(next(it), (num_heads, d_head, d_emb), jnp.float32) / jnp.sqrt(d_emb)
        wq = jax.random.normal(next(it), (num_heads, d_head, d_emb), jnp.float32) / jnp.sqrt(d_emb)
        wv = jax.random.normal(next(it), (num_heads, d_head, d_emb), jnp.float32) / jnp.sqrt(d_emb)
        atten.append((wk, wq, wv))

    mlp = []
    for _ in range(num_layers):
        w = jax.random.normal(next(it), (d_emb, d_emb), jnp.float32) / jnp.sqrt(d_emb)
        b = jax.random.normal(next(it), (d_emb,), jnp.float32) * 0.01
        mlp.append((w, b))

    w_cls = jax.random.normal(next(it), (d_vocab, d_emb), jnp.float32) / jnp.sqrt(d_emb)
    b_cls = jax.random.normal(next(it), (d_vocab,), jnp.float32) * 0.01

    return {
        "tok_emb": tok_emb,
        "label_emb": label_emb,
        "atten": atten,
        "mlp": mlp,
        "classifier": (w_cls, b_cls),
    }


if __name__ == "__main__":
    # small config consistent with the module
    B, N_CTX, D_EMB, NUM_HEADS = 2, 8, 32, 4
    D_VOCAB = 16
    NUM_ATTEN_LAYER, NUM_LAYERS = 2, 2
    USE_SCALED_ATTENTION = False

    key = jax.random.PRNGKey(0)
    k_params, k_tok, k_lab = jax.random.split(key, 3)

    params = make_params(k_params, d_emb=D_EMB, num_heads=NUM_HEADS,
                         n_ctx=N_CTX, d_vocab=D_VOCAB,
                         num_atten_layer=NUM_ATTEN_LAYER, num_layers=NUM_LAYERS)
    packed = pack_params(params)          # one-time packing, hoisted off the hot path

    tokens = jax.random.randint(k_tok, (B, N_CTX), 0, D_VOCAB)
    labels = jax.random.randint(k_lab, (B, N_CTX), 0, D_VOCAB)

    out = transformer_icl_forward(packed, tokens, labels,
                                  use_scaled_attention=USE_SCALED_ATTENTION)
    out = jax.block_until_ready(out)
    assert out.shape == (B, N_CTX, D_VOCAB), out.shape
    assert out.dtype == jnp.float32
    print("KERNEL_OK")
</pallas_src>

<mosaic_0001>
module attributes {stable_mosaic.version = 11 : i64} {
  func.func @_fused_forward_kernel(%arg0: memref<16x1xi32, #tpu.memory_space<vmem>>, %arg1: memref<16x1xi32, #tpu.memory_space<vmem>>, %arg2: memref<16x32xf32, #tpu.memory_space<vmem>>, %arg3: memref<16x32xf32, #tpu.memory_space<vmem>>, %arg4: memref<2x32x96xbf16, #tpu.memory_space<vmem>>, %arg5: memref<2x32x32xbf16, #tpu.memory_space<vmem>>, %arg6: memref<2x1x32xf32, #tpu.memory_space<vmem>>, %arg7: memref<32x128xbf16, #tpu.memory_space<vmem>>, %arg8: memref<1x128xf32, #tpu.memory_space<vmem>>, %arg9: memref<16x128xf32, #tpu.memory_space<vmem>>) attributes {dimension_semantics = [], scalar_prefetch = 0 : i64, scratch_operands = 0 : i64, tpu.core_type = #tpu.core_type<tc>} {
    %0 = tpu.iota {dimensions = array<i32: 1>} : vector<16x16xi32>
    %c0 = arith.constant 0 : index
    %c0_0 = arith.constant 0 : index
    %1 = vector.load %arg0[%c0, %c0_0] : memref<16x1xi32, #tpu.memory_space<vmem>>, vector<16x1xi32>
    %2 = vector.broadcast %1 : vector<16x1xi32> to vector<16x16xi32>
    %3 = arith.cmpi eq, %2, %0 : vector<16x16xi32>
    %4 = arith.extui %3 : vector<16x16xi1> to vector<16x16xi32>
    %5 = arith.sitofp %4 : vector<16x16xi32> to vector<16x16xf32>
    %c0_1 = arith.constant 0 : index
    %c0_2 = arith.constant 0 : index
    %6 = vector.load %arg1[%c0_1, %c0_2] : memref<16x1xi32, #tpu.memory_space<vmem>>, vector<16x1xi32>
    %7 = vector.broadcast %6 : vector<16x1xi32> to vector<16x16xi32>
    %8 = arith.cmpi eq, %7, %0 : vector<16x16xi32>
    %9 = arith.extui %8 : vector<16x16xi1> to vector<16x16xi32>
    %10 = arith.sitofp %9 : vector<16x16xi32> to vector<16x16xf32>
    %c0_3 = arith.constant 0 : index
    %c0_4 = arith.constant 0 : index
    %11 = vector.load %arg2[%c0_3, %c0_4] : memref<16x32xf32, #tpu.memory_space<vmem>>, vector<16x32xf32>
    %cst = arith.constant dense<0.000000e+00> : vector<16x32xf32>
    %12 = tpu.matmul %5, %11, %cst {dimension_numbers = #tpu.dot_dimension_numbers<[1], [0], [0], [1], [0, 0, 1, 1], [], []>} : vector<16x16xf32>, vector<16x32xf32>, vector<16x32xf32> -> vector<16x32xf32>
    %c0_5 = arith.constant 0 : index
    %c0_6 = arith.constant 0 : index
    %13 = vector.load %arg3[%c0_5, %c0_6] : memref<16x32xf32, #tpu.memory_space<vmem>>, vector<16x32xf32>
    %cst_7 = arith.constant dense<0.000000e+00> : vector<16x32xf32>
    %14 = tpu.matmul %10, %13, %cst_7 {dimension_numbers = #tpu.dot_dimension_numbers<[1], [0], [0], [1], [0, 0, 1, 1], [], []>} : vector<16x16xf32>, vector<16x32xf32>, vector<16x32xf32> -> vector<16x32xf32>
    %15 = arith.addf %12, %14 : vector<16x32xf32>
    %16 = vector.shape_cast %15 : vector<16x32xf32> to vector<2x8x32xf32>
    %17 = tpu.iota {dimensions = array<i32: 0>} : vector<8x8xi32>
    %18 = tpu.iota {dimensions = array<i32: 1>} : vector<8x8xi32>
    %19 = arith.cmpi sle, %18, %17 : vector<8x8xi32>
    %20 = vector.shape_cast %19 : vector<8x8xi1> to vector<1x8x8xi1>
    %21 = vector.shape_cast %16 : vector<2x8x32xf32> to vector<16x32xf32>
    %22 = arith.truncf %21 : vector<16x32xf32> to vector<16x32xbf16>
    %c0_8 = arith.constant 0 : index
    %c0_9 = arith.constant 0 : index
    %c0_10 = arith.constant 0 : index
    %23 = vector.load %arg4[%c0_8, %c0_9, %c0_10] : memref<2x32x96xbf16, #tpu.memory_space<vmem>>, vector<1x32x96xbf16>
    %24 = vector.shape_cast %23 : vector<1x32x96xbf16> to vector<32x96xbf16>
    %cst_11 = arith.constant dense<0.000000e+00> : vector<16x96xf32>
    %25 = tpu.matmul %22, %24, %cst_11 {dimension_numbers = #tpu.dot_dimension_numbers<[1], [0], [0], [1], [0, 0, 1, 1], [], []>} : vector<16x32xbf16>, vector<32x96xbf16>, vector<16x96xf32> -> vector<16x96xf32>
    %26 = vector.shape_cast %25 : vector<16x96xf32> to vector<2x8x96xf32>
    %27 = vector.extract_strided_slice %26 {offsets = [0, 0, 0], sizes = [2, 8, 8], strides = [1, 1, 1]} : vector<2x8x96xf32> to vector<2x8x8xf32>
    %28 = arith.truncf %27 : vector<2x8x8xf32> to vector<2x8x8xbf16>
    %29 = vector.extract_strided_slice %26 {offsets = [0, 0, 32], sizes = [2, 8, 8], strides = [1, 1, 1]} : vector<2x8x96xf32> to vector<2x8x8xf32>
    %30 = arith.truncf %29 : vector<2x8x8xf32> to vector<2x8x8xbf16>
    %31 = vector.extract_strided_slice %26 {offsets = [0, 0, 64], sizes = [2, 8, 8], strides = [1, 1, 1]} : vector<2x8x96xf32> to vector<2x8x8xf32>
    %32 = arith.truncf %31 : vector<2x8x8xf32> to vector<2x8x8xbf16>
    "tpu.trace_start"() <{level = 10 : i32, message = "bqh,bph->bqp"}> : () -> ()
    %cst_12 = arith.constant dense<0.000000e+00> : vector<2x8x8xf32>
    %33 = tpu.matmul %28, %30, %cst_12 {dimension_numbers = #tpu.dot_dimension_numbers<[2], [2], [1], [1], [0, 0, 0, 1, 1, 1], [0], [0]>} : vector<2x8x8xbf16>, vector<2x8x8xbf16>, vector<2x8x8xf32> -> vector<2x8x8xf32>
    %cst_13 = arith.constant -1.000000e+10 : f32
    "tpu.trace_stop"() : () -> ()
    %34 = vector.shape_cast %20 : vector<1x8x8xi1> to vector<1x8x8xi1>
    %35 = vector.broadcast %34 : vector<1x8x8xi1> to vector<2x8x8xi1>
    %36 = vector.broadcast %cst_13 : f32 to vector<2x8x8xf32>
    %37 = arith.select %35, %33, %36 : vector<2x8x8xi1>, vector<2x8x8xf32>
    %cst_14 = arith.constant dense<0xFF800000> : vector<2x8xf32>
    %38 = vector.multi_reduction <maximumf>, %37, %cst_14 [2] : vector<2x8x8xf32> to vector<2x8xf32>
    %39 = vector.shape_cast %38 : vector<2x8xf32> to vector<2x8x1xf32>
    %40 = vector.broadcast %39 : vector<2x8x1xf32> to vector<2x8x8xf32>
    %41 = arith.subf %37, %40 : vector<2x8x8xf32>
    %42 = math.exp %41 : vector<2x8x8xf32>
    %cst_15 = arith.constant dense<0.000000e+00> : vector<2x8xf32>
    %43 = vector.multi_reduction <add>, %42, %cst_15 [2] : vector<2x8x8xf32> to vector<2x8xf32>
    %44 = vector.shape_cast %43 : vector<2x8xf32> to vector<2x8x1xf32>
    %45 = tpu.reciprocal %44 {approx = true} : vector<2x8x1xf32> -> vector<2x8x1xf32>
    %46 = vector.broadcast %45 : vector<2x8x1xf32> to vector<2x8x8xf32>
    %47 = arith.mulf %42, %46 : vector<2x8x8xf32>
    %48 = arith.truncf %47 : vector<2x8x8xf32> to vector<2x8x8xbf16>
    "tpu.trace_start"() <{level = 10 : i32, message = "bqp,bph->bqh"}> : () -> ()
    %cst_16 = arith.constant dense<0.000000e+00> : vector<2x8x8xf32>
    %49 = tpu.matmul %48, %32, %cst_16 {dimension_numbers = #tpu.dot_dimension_numbers<[2], [1], [1], [2], [0, 0, 0, 1, 1, 2], [0], [0]>} : vector<2x8x8xbf16>, vector<2x8x8xbf16>, vector<2x8x8xf32> -> vector<2x8x8xf32>
    "tpu.trace_stop"() : () -> ()
    %50 = vector.extract_strided_slice %26 {offsets = [0, 0, 8], sizes = [2, 8, 8], strides = [1, 1, 1]} : vector<2x8x96xf32> to vector<2x8x8xf32>
    %51 = arith.truncf %50 : vector<2x8x8xf32> to vector<2x8x8xbf16>
    %52 = vector.extract_strided_slice %26 {offsets = [0, 0, 40], sizes = [2, 8, 8], strides = [1, 1, 1]} : vector<2x8x96xf32> to vector<2x8x8xf32>
    %53 = arith.truncf %52 : vector<2x8x8xf32> to vector<2x8x8xbf16>
    %54 = vector.extract_strided_slice %26 {offsets = [0, 0, 72], sizes = [2, 8, 8], strides = [1, 1, 1]} : vector<2x8x96xf32> to vector<2x8x8xf32>
    %55 = arith.truncf %54 : vector<2x8x8xf32> to vector<2x8x8xbf16>
    "tpu.trace_start"() <{level = 10 : i32, message = "bqh,bph->bqp"}> : () -> ()
    %cst_17 = arith.constant dense<0.000000e+00> : vector<2x8x8xf32>
    %56 = tpu.matmul %51, %53, %cst_17 {dimension_numbers = #tpu.dot_dimension_numbers<[2], [2], [1], [1], [0, 0, 0, 1, 1, 1], [0], [0]>} : vector<2x8x8xbf16>, vector<2x8x8xbf16>, vector<2x8x8xf32> -> vector<2x8x8xf32>
    %cst_18 = arith.constant -1.000000e+10 : f32
    "tpu.trace_stop"() : () -> ()
    %57 = vector.shape_cast %20 : vector<1x8x8xi1> to vector<1x8x8xi1>
    %58 = vector.broadcast %57 : vector<1x8x8xi1> to vector<2x8x8xi1>
    %59 = vector.broadcast %cst_18 : f32 to vector<2x8x8xf32>
    %60 = arith.select %58, %56, %59 : vector<2x8x8xi1>, vector<2x8x8xf32>
    %cst_19 = arith.constant dense<0xFF800000> : vector<2x8xf32>
    %61 = vector.multi_reduction <maximumf>, %60, %cst_19 [2] : vector<2x8x8xf32> to vector<2x8xf32>
    %62 = vector.shape_cast %61 : vector<2x8xf32> to vector<2x8x1xf32>
    %63 = vector.broadcast %62 : vector<2x8x1xf32> to vector<2x8x8xf32>
    %64 = arith.subf %60, %63 : vector<2x8x8xf32>
    %65 = math.exp %64 : vector<2x8x8xf32>
    %cst_20 = arith.constant dense<0.000000e+00> : vector<2x8xf32>
    %66 = vector.multi_reduction <add>, %65, %cst_20 [2] : vector<2x8x8xf32> to vector<2x8xf32>
    %67 = vector.shape_cast %66 : vector<2x8xf32> to vector<2x8x1xf32>
    %68 = tpu.reciprocal %67 {approx = true} : vector<2x8x1xf32> -> vector<2x8x1xf32>
    %69 = vector.broadcast %68 : vector<2x8x1xf32> to vector<2x8x8xf32>
    %70 = arith.mulf %65, %69 : vector<2x8x8xf32>
    %71 = arith.truncf %70 : vector<2x8x8xf32> to vector<2x8x8xbf16>
    "tpu.trace_start"() <{level = 10 : i32, message = "bqp,bph->bqh"}> : () -> ()
    %cst_21 = arith.constant dense<0.000000e+00> : vector<2x8x8xf32>
    %72 = tpu.matmul %71, %55, %cst_21 {dimension_numbers = #tpu.dot_dimension_numbers<[2], [1], [1], [2], [0, 0, 0, 1, 1, 2], [0], [0]>} : vector<2x8x8xbf16>, vector<2x8x8xbf16>, vector<2x8x8xf32> -> vector<2x8x8xf32>
    "tpu.trace_stop"() : () -> ()
    %73 = vector.extract_strided_slice %26 {offsets = [0, 0, 16], sizes = [2, 8, 8], strides = [1, 1, 1]} : vector<2x8x96xf32> to vector<2x8x8xf32>
    %74 = arith.truncf %73 : vector<2x8x8xf32> to vector<2x8x8xbf16>
    %75 = vector.extract_strided_slice %26 {offsets = [0, 0, 48], sizes = [2, 8, 8], strides = [1, 1, 1]} : vector<2x8x96xf32> to vector<2x8x8xf32>
    %76 = arith.truncf %75 : vector<2x8x8xf32> to vector<2x8x8xbf16>
    %77 = vector.extract_strided_slice %26 {offsets = [0, 0, 80], sizes = [2, 8, 8], strides = [1, 1, 1]} : vector<2x8x96xf32> to vector<2x8x8xf32>
    %78 = arith.truncf %77 : vector<2x8x8xf32> to vector<2x8x8xbf16>
    "tpu.trace_start"() <{level = 10 : i32, message = "bqh,bph->bqp"}> : () -> ()
    %cst_22 = arith.constant dense<0.000000e+00> : vector<2x8x8xf32>
    %79 = tpu.matmul %74, %76, %cst_22 {dimension_numbers = #tpu.dot_dimension_numbers<[2], [2], [1], [1], [0, 0, 0, 1, 1, 1], [0], [0]>} : vector<2x8x8xbf16>, vector<2x8x8xbf16>, vector<2x8x8xf32> -> vector<2x8x8xf32>
    %cst_23 = arith.constant -1.000000e+10 : f32
    "tpu.trace_stop"() : () -> ()
    %80 = vector.shape_cast %20 : vector<1x8x8xi1> to vector<1x8x8xi1>
    %81 = vector.broadcast %80 : vector<1x8x8xi1> to vector<2x8x8xi1>
    %82 = vector.broadcast %cst_23 : f32 to vector<2x8x8xf32>
    %83 = arith.select %81, %79, %82 : vector<2x8x8xi1>, vector<2x8x8xf32>
    %cst_24 = arith.constant dense<0xFF800000> : vector<2x8xf32>
    %84 = vector.multi_reduction <maximumf>, %83, %cst_24 [2] : vector<2x8x8xf32> to vector<2x8xf32>
    %85 = vector.shape_cast %84 : vector<2x8xf32> to vector<2x8x1xf32>
    %86 = vector.broadcast %85 : vector<2x8x1xf32> to vector<2x8x8xf32>
    %87 = arith.subf %83, %86 : vector<2x8x8xf32>
    %88 = math.exp %87 : vector<2x8x8xf32>
    %cst_25 = arith.constant dense<0.000000e+00> : vector<2x8xf32>
    %89 = vector.multi_reduction <add>, %88, %cst_25 [2] : vector<2x8x8xf32> to vector<2x8xf32>
    %90 = vector.shape_cast %89 : vector<2x8xf32> to vector<2x8x1xf32>
    %91 = tpu.reciprocal %90 {approx = true} : vector<2x8x1xf32> -> vector<2x8x1xf32>
    %92 = vector.broadcast %91 : vector<2x8x1xf32> to vector<2x8x8xf32>
    %93 = arith.mulf %88, %92 : vector<2x8x8xf32>
    %94 = arith.truncf %93 : vector<2x8x8xf32> to vector<2x8x8xbf16>
    "tpu.trace_start"() <{level = 10 : i32, message = "bqp,bph->bqh"}> : () -> ()
    %cst_26 = arith.constant dense<0.000000e+00> : vector<2x8x8xf32>
    %95 = tpu.matmul %94, %78, %cst_26 {dimension_numbers = #tpu.dot_dimension_numbers<[2], [1], [1], [2], [0, 0, 0, 1, 1, 2], [0], [0]>} : vector<2x8x8xbf16>, vector<2x8x8xbf16>, vector<2x8x8xf32> -> vector<2x8x8xf32>
    "tpu.trace_stop"() : () -> ()
    %96 = vector.extract_strided_slice %26 {offsets = [0, 0, 24], sizes = [2, 8, 8], strides = [1, 1, 1]} : vector<2x8x96xf32> to vector<2x8x8xf32>
    %97 = arith.truncf %96 : vector<2x8x8xf32> to vector<2x8x8xbf16>
    %98 = vector.extract_strided_slice %26 {offsets = [0, 0, 56], sizes = [2, 8, 8], strides = [1, 1, 1]} : vector<2x8x96xf32> to vector<2x8x8xf32>
    %99 = arith.truncf %98 : vector<2x8x8xf32> to vector<2x8x8xbf16>
    %100 = vector.extract_strided_slice %26 {offsets = [0, 0, 88], sizes = [2, 8, 8], strides = [1, 1, 1]} : vector<2x8x96xf32> to vector<2x8x8xf32>
    %101 = arith.truncf %100 : vector<2x8x8xf32> to vector<2x8x8xbf16>
    "tpu.trace_start"() <{level = 10 : i32, message = "bqh,bph->bqp"}> : () -> ()
    %cst_27 = arith.constant dense<0.000000e+00> : vector<2x8x8xf32>
    %102 = tpu.matmul %97, %99, %cst_27 {dimension_numbers = #tpu.dot_dimension_numbers<[2], [2], [1], [1], [0, 0, 0, 1, 1, 1], [0], [0]>} : vector<2x8x8xbf16>, vector<2x8x8xbf16>, vector<2x8x8xf32> -> vector<2x8x8xf32>
    %cst_28 = arith.constant -1.000000e+10 : f32
    "tpu.trace_stop"() : () -> ()
    %103 = vector.shape_cast %20 : vector<1x8x8xi1> to vector<1x8x8xi1>
    %104 = vector.broadcast %103 : vector<1x8x8xi1> to vector<2x8x8xi1>
    %105 = vector.broadcast %cst_28 : f32 to vector<2x8x8xf32>
    %106 = arith.select %104, %102, %105 : vector<2x8x8xi1>, vector<2x8x8xf32>
    %cst_29 = arith.constant dense<0xFF800000> : vector<2x8xf32>
    %107 = vector.multi_reduction <maximumf>, %106, %cst_29 [2] : vector<2x8x8xf32> to vector<2x8xf32>
    %108 = vector.shape_cast %107 : vector<2x8xf32> to vector<2x8x1xf32>
    %109 = vector.broadcast %108 : vector<2x8x1xf32> to vector<2x8x8xf32>
    %110 = arith.subf %106, %109 : vector<2x8x8xf32>
    %111 = math.exp %110 : vector<2x8x8xf32>
    %cst_30 = arith.constant dense<0.000000e+00> : vector<2x8xf32>
    %112 = vector.multi_reduction <add>, %111, %cst_30 [2] : vector<2x8x8xf32> to vector<2x8xf32>
    %113 = vector.shape_cast %112 : vector<2x8xf32> to vector<2x8x1xf32>
    %114 = tpu.reciprocal %113 {approx = true} : vector<2x8x1xf32> -> vector<2x8x1xf32>
    %115 = vector.broadcast %114 : vector<2x8x1xf32> to vector<2x8x8xf32>
    %116 = arith.mulf %111, %115 : vector<2x8x8xf32>
    %117 = arith.truncf %116 : vector<2x8x8xf32> to vector<2x8x8xbf16>
    "tpu.trace_start"() <{level = 10 : i32, message = "bqp,bph->bqh"}> : () -> ()
    %cst_31 = arith.constant dense<0.000000e+00> : vector<2x8x8xf32>
    %118 = tpu.matmul %117, %101, %cst_31 {dimension_numbers = #tpu.dot_dimension_numbers<[2], [1], [1], [2], [0, 0, 0, 1, 1, 2], [0], [0]>} : vector<2x8x8xbf16>, vector<2x8x8xbf16>, vector<2x8x8xf32> -> vector<2x8x8xf32>
    "tpu.trace_stop"() : () -> ()
    %119 = tpu.concatenate %49, %72, %95, %118 in 2 : vector<2x8x8xf32>, vector<2x8x8xf32>, vector<2x8x8xf32>, vector<2x8x8xf32> -> vector<2x8x32xf32>
    %120 = arith.addf %119, %16 : vector<2x8x32xf32>
    %121 = vector.shape_cast %120 : vector<2x8x32xf32> to vector<16x32xf32>
    %122 = arith.truncf %121 : vector<16x32xf32> to vector<16x32xbf16>
    %c1 = arith.constant 1 : index
    %c0_32 = arith.constant 0 : index
    %c0_33 = arith.constant 0 : index
    %123 = vector.load %arg4[%c1, %c0_32, %c0_33] : memref<2x32x96xbf16, #tpu.memory_space<vmem>>, vector<1x32x96xbf16>
    %124 = vector.shape_cast %123 : vector<1x32x96xbf16> to vector<32x96xbf16>
    %cst_34 = arith.constant dense<0.000000e+00> : vector<16x96xf32>
    %125 = tpu.matmul %122, %124, %cst_34 {dimension_numbers = #tpu.dot_dimension_numbers<[1], [0], [0], [1], [0, 0, 1, 1], [], []>} : vector<16x32xbf16>, vector<32x96xbf16>, vector<16x96xf32> -> vector<16x96xf32>
    %126 = vector.shape_cast %125 : vector<16x96xf32> to vector<2x8x96xf32>
    %127 = vector.extract_strided_slice %126 {offsets = [0, 0, 0], sizes = [2, 8, 8], strides = [1, 1, 1]} : vector<2x8x96xf32> to vector<2x8x8xf32>
    %128 = arith.truncf %127 : vector<2x8x8xf32> to vector<2x8x8xbf16>
    %129 = vector.extract_strided_slice %126 {offsets = [0, 0, 32], sizes = [2, 8, 8], strides = [1, 1, 1]} : vector<2x8x96xf32> to vector<2x8x8xf32>
    %130 = arith.truncf %129 : vector<2x8x8xf32> to vector<2x8x8xbf16>
    %131 = vector.extract_strided_slice %126 {offsets = [0, 0, 64], sizes = [2, 8, 8], strides = [1, 1, 1]} : vector<2x8x96xf32> to vector<2x8x8xf32>
    %132 = arith.truncf %131 : vector<2x8x8xf32> to vector<2x8x8xbf16>
    "tpu.trace_start"() <{level = 10 : i32, message = "bqh,bph->bqp"}> : () -> ()
    %cst_35 = arith.constant dense<0.000000e+00> : vector<2x8x8xf32>
    %133 = tpu.matmul %128, %130, %cst_35 {dimension_numbers = #tpu.dot_dimension_numbers<[2], [2], [1], [1], [0, 0, 0, 1, 1, 1], [0], [0]>} : vector<2x8x8xbf16>, vector<2x8x8xbf16>, vector<2x8x8xf32> -> vector<2x8x8xf32>
    %cst_36 = arith.constant -1.000000e+10 : f32
    "tpu.trace_stop"() : () -> ()
    %134 = vector.shape_cast %20 : vector<1x8x8xi1> to vector<1x8x8xi1>
    %135 = vector.broadcast %134 : vector<1x8x8xi1> to vector<2x8x8xi1>
    %136 = vector.broadcast %cst_36 : f32 to vector<2x8x8xf32>
    %137 = arith.select %135, %133, %136 : vector<2x8x8xi1>, vector<2x8x8xf32>
    %cst_37 = arith.constant dense<0xFF800000> : vector<2x8xf32>
    %138 = vector.multi_reduction <maximumf>, %137, %cst_37 [2] : vector<2x8x8xf32> to vector<2x8xf32>
    %139 = vector.shape_cast %138 : vector<2x8xf32> to vector<2x8x1xf32>
    %140 = vector.broadcast %139 : vector<2x8x1xf32> to vector<2x8x8xf32>
    %141 = arith.subf %137, %140 : vector<2x8x8xf32>
    %142 = math.exp %141 : vector<2x8x8xf32>
    %cst_38 = arith.constant dense<0.000000e+00> : vector<2x8xf32>
    %143 = vector.multi_reduction <add>, %142, %cst_38 [2] : vector<2x8x8xf32> to vector<2x8xf32>
    %144 = vector.shape_cast %143 : vector<2x8xf32> to vector<2x8x1xf32>
    %145 = tpu.reciprocal %144 {approx = true} : vector<2x8x1xf32> -> vector<2x8x1xf32>
    %146 = vector.broadcast %145 : vector<2x8x1xf32> to vector<2x8x8xf32>
    %147 = arith.mulf %142, %146 : vector<2x8x8xf32>
    %148 = arith.truncf %147 : vector<2x8x8xf32> to vector<2x8x8xbf16>
    "tpu.trace_start"() <{level = 10 : i32, message = "bqp,bph->bqh"}> : () -> ()
    %cst_39 = arith.constant dense<0.000000e+00> : vector<2x8x8xf32>
    %149 = tpu.matmul %148, %132, %cst_39 {dimension_numbers = #tpu.dot_dimension_numbers<[2], [1], [1], [2], [0, 0, 0, 1, 1, 2], [0], [0]>} : vector<2x8x8xbf16>, vector<2x8x8xbf16>, vector<2x8x8xf32> -> vector<2x8x8xf32>
    "tpu.trace_stop"() : () -> ()
    %150 = vector.extract_strided_slice %126 {offsets = [0, 0, 8], sizes = [2, 8, 8], strides = [1, 1, 1]} : vector<2x8x96xf32> to vector<2x8x8xf32>
    %151 = arith.truncf %150 : vector<2x8x8xf32> to vector<2x8x8xbf16>
    %152 = vector.extract_strided_slice %126 {offsets = [0, 0, 40], sizes = [2, 8, 8], strides = [1, 1, 1]} : vector<2x8x96xf32> to vector<2x8x8xf32>
    %153 = arith.truncf %152 : vector<2x8x8xf32> to vector<2x8x8xbf16>
    %154 = vector.extract_strided_slice %126 {offsets = [0, 0, 72], sizes = [2, 8, 8], strides = [1, 1, 1]} : vector<2x8x96xf32> to vector<2x8x8xf32>
    %155 = arith.truncf %154 : vector<2x8x8xf32> to vector<2x8x8xbf16>
    "tpu.trace_start"() <{level = 10 : i32, message = "bqh,bph->bqp"}> : () -> ()
    %cst_40 = arith.constant dense<0.000000e+00> : vector<2x8x8xf32>
    %156 = tpu.matmul %151, %153, %cst_40 {dimension_numbers = #tpu.dot_dimension_numbers<[2], [2], [1], [1], [0, 0, 0, 1, 1, 1], [0], [0]>} : vector<2x8x8xbf16>, vector<2x8x8xbf16>, vector<2x8x8xf32> -> vector<2x8x8xf32>
    %cst_41 = arith.constant -1.000000e+10 : f32
    "tpu.trace_stop"() : () -> ()
    %157 = vector.shape_cast %20 : vector<1x8x8xi1> to vector<1x8x8xi1>
    %158 = vector.broadcast %157 : vector<1x8x8xi1> to vector<2x8x8xi1>
    %159 = vector.broadcast %cst_41 : f32 to vector<2x8x8xf32>
    %160 = arith.select %158, %156, %159 : vector<2x8x8xi1>, vector<2x8x8xf32>
    %cst_42 = arith.constant dense<0xFF800000> : vector<2x8xf32>
    %161 = vector.multi_reduction <maximumf>, %160, %cst_42 [2] : vector<2x8x8xf32> to vector<2x8xf32>
    %162 = vector.shape_cast %161 : vector<2x8xf32> to vector<2x8x1xf32>
    %163 = vector.broadcast %162 : vector<2x8x1xf32> to vector<2x8x8xf32>
    %164 = arith.subf %160, %163 : vector<2x8x8xf32>
    %165 = math.exp %164 : vector<2x8x8xf32>
    %cst_43 = arith.constant dense<0.000000e+00> : vector<2x8xf32>
    %166 = vector.multi_reduction <add>, %165, %cst_43 [2] : vector<2x8x8xf32> to vector<2x8xf32>
    %167 = vector.shape_cast %166 : vector<2x8xf32> to vector<2x8x1xf32>
    %168 = tpu.reciprocal %167 {approx = true} : vector<2x8x1xf32> -> vector<2x8x1xf32>
    %169 = vector.broadcast %168 : vector<2x8x1xf32> to vector<2x8x8xf32>
    %170 = arith.mulf %165, %169 : vector<2x8x8xf32>
    %171 = arith.truncf %170 : vector<2x8x8xf32> to vector<2x8x8xbf16>
    "tpu.trace_start"() <{level = 10 : i32, message = "bqp,bph->bqh"}> : () -> ()
    %cst_44 = arith.constant dense<0.000000e+00> : vector<2x8x8xf32>
    %172 = tpu.matmul %171, %155, %cst_44 {dimension_numbers = #tpu.dot_dimension_numbers<[2], [1], [1], [2], [0, 0, 0, 1, 1, 2], [0], [0]>} : vector<2x8x8xbf16>, vector<2x8x8xbf16>, vector<2x8x8xf32> -> vector<2x8x8xf32>
    "tpu.trace_stop"() : () -> ()
    %173 = vector.extract_strided_slice %126 {offsets = [0, 0, 16], sizes = [2, 8, 8], strides = [1, 1, 1]} : vector<2x8x96xf32> to vector<2x8x8xf32>
    %174 = arith.truncf %173 : vector<2x8x8xf32> to vector<2x8x8xbf16>
    %175 = vector.extract_strided_slice %126 {offsets = [0, 0, 48], sizes = [2, 8, 8], strides = [1, 1, 1]} : vector<2x8x96xf32> to vector<2x8x8xf32>
    %176 = arith.truncf %175 : vector<2x8x8xf32> to vector<2x8x8xbf16>
    %177 = vector.extract_strided_slice %126 {offsets = [0, 0, 80], sizes = [2, 8, 8], strides = [1, 1, 1]} : vector<2x8x96xf32> to vector<2x8x8xf32>
    %178 = arith.truncf %177 : vector<2x8x8xf32> to vector<2x8x8xbf16>
    "tpu.trace_start"() <{level = 10 : i32, message = "bqh,bph->bqp"}> : () -> ()
    %cst_45 = arith.constant dense<0.000000e+00> : vector<2x8x8xf32>
    %179 = tpu.matmul %174, %176, %cst_45 {dimension_numbers = #tpu.dot_dimension_numbers<[2], [2], [1], [1], [0, 0, 0, 1, 1, 1], [0], [0]>} : vector<2x8x8xbf16>, vector<2x8x8xbf16>, vector<2x8x8xf32> -> vector<2x8x8xf32>
    %cst_46 = arith.constant -1.000000e+10 : f32
    "tpu.trace_stop"() : () -> ()
    %180 = vector.shape_cast %20 : vector<1x8x8xi1> to vector<1x8x8xi1>
    %181 = vector.broadcast %180 : vector<1x8x8xi1> to vector<2x8x8xi1>
    %182 = vector.broadcast %cst_46 : f32 to vector<2x8x8xf32>
    %183 = arith.select %181, %179, %182 : vector<2x8x8xi1>, vector<2x8x8xf32>
    %cst_47 = arith.constant dense<0xFF800000> : vector<2x8xf32>
    %184 = vector.multi_reduction <maximumf>, %183, %cst_47 [2] : vector<2x8x8xf32> to vector<2x8xf32>
    %185 = vector.shape_cast %184 : vector<2x8xf32> to vector<2x8x1xf32>
    %186 = vector.broadcast %185 : vector<2x8x1xf32> to vector<2x8x8xf32>
    %187 = arith.subf %183, %186 : vector<2x8x8xf32>
    %188 = math.exp %187 : vector<2x8x8xf32>
    %cst_48 = arith.constant dense<0.000000e+00> : vector<2x8xf32>
    %189 = vector.multi_reduction <add>, %188, %cst_48 [2] : vector<2x8x8xf32> to vector<2x8xf32>
    %190 = vector.shape_cast %189 : vector<2x8xf32> to vector<2x8x1xf32>
    %191 = tpu.reciprocal %190 {approx = true} : vector<2x8x1xf32> -> vector<2x8x1xf32>
    %192 = vector.broadcast %191 : vector<2x8x1xf32> to vector<2x8x8xf32>
    %193 = arith.mulf %188, %192 : vector<2x8x8xf32>
    %194 = arith.truncf %193 : vector<2x8x8xf32> to vector<2x8x8xbf16>
    "tpu.trace_start"() <{level = 10 : i32, message = "bqp,bph->bqh"}> : () -> ()
    %cst_49 = arith.constant dense<0.000000e+00> : vector<2x8x8xf32>
    %195 = tpu.matmul %194, %178, %cst_49 {dimension_numbers = #tpu.dot_dimension_numbers<[2], [1], [1], [2], [0, 0, 0, 1, 1, 2], [0], [0]>} : vector<2x8x8xbf16>, vector<2x8x8xbf16>, vector<2x8x8xf32> -> vector<2x8x8xf32>
    "tpu.trace_stop"() : () -> ()
    %196 = vector.extract_strided_slice %126 {offsets = [0, 0, 24], sizes = [2, 8, 8], strides = [1, 1, 1]} : vector<2x8x96xf32> to vector<2x8x8xf32>
    %197 = arith.truncf %196 : vector<2x8x8xf32> to vector<2x8x8xbf16>
    %198 = vector.extract_strided_slice %126 {offsets = [0, 0, 56], sizes = [2, 8, 8], strides = [1, 1, 1]} : vector<2x8x96xf32> to vector<2x8x8xf32>
    %199 = arith.truncf %198 : vector<2x8x8xf32> to vector<2x8x8xbf16>
    %200 = vector.extract_strided_slice %126 {offsets = [0, 0, 88], sizes = [2, 8, 8], strides = [1, 1, 1]} : vector<2x8x96xf32> to vector<2x8x8xf32>
    %201 = arith.truncf %200 : vector<2x8x8xf32> to vector<2x8x8xbf16>
    "tpu.trace_start"() <{level = 10 : i32, message = "bqh,bph->bqp"}> : () -> ()
    %cst_50 = arith.constant dense<0.000000e+00> : vector<2x8x8xf32>
    %202 = tpu.matmul %197, %199, %cst_50 {dimension_numbers = #tpu.dot_dimension_numbers<[2], [2], [1], [1], [0, 0, 0, 1, 1, 1], [0], [0]>} : vector<2x8x8xbf16>, vector<2x8x8xbf16>, vector<2x8x8xf32> -> vector<2x8x8xf32>
    %cst_51 = arith.constant -1.000000e+10 : f32
    "tpu.trace_stop"() : () -> ()
    %203 = vector.shape_cast %20 : vector<1x8x8xi1> to vector<1x8x8xi1>
    %204 = vector.broadcast %203 : vector<1x8x8xi1> to vector<2x8x8xi1>
    %205 = vector.broadcast %cst_51 : f32 to vector<2x8x8xf32>
    %206 = arith.select %204, %202, %205 : vector<2x8x8xi1>, vector<2x8x8xf32>
    %cst_52 = arith.constant dense<0xFF800000> : vector<2x8xf32>
    %207 = vector.multi_reduction <maximumf>, %206, %cst_52 [2] : vector<2x8x8xf32> to vector<2x8xf32>
    %208 = vector.shape_cast %207 : vector<2x8xf32> to vector<2x8x1xf32>
    %209 = vector.broadcast %208 : vector<2x8x1xf32> to vector<2x8x8xf32>
    %210 = arith.subf %206, %209 : vector<2x8x8xf32>
    %211 = math.exp %210 : vector<2x8x8xf32>
    %cst_53 = arith.constant dense<0.000000e+00> : vector<2x8xf32>
    %212 = vector.multi_reduction <add>, %211, %cst_53 [2] : vector<2x8x8xf32> to vector<2x8xf32>
    %213 = vector.shape_cast %212 : vector<2x8xf32> to vector<2x8x1xf32>
    %214 = tpu.reciprocal %213 {approx = true} : vector<2x8x1xf32> -> vector<2x8x1xf32>
    %215 = vector.broadcast %214 : vector<2x8x1xf32> to vector<2x8x8xf32>
    %216 = arith.mulf %211, %215 : vector<2x8x8xf32>
    %217 = arith.truncf %216 : vector<2x8x8xf32> to vector<2x8x8xbf16>
    "tpu.trace_start"() <{level = 10 : i32, message = "bqp,bph->bqh"}> : () -> ()
    %cst_54 = arith.constant dense<0.000000e+00> : vector<2x8x8xf32>
    %218 = tpu.matmul %217, %201, %cst_54 {dimension_numbers = #tpu.dot_dimension_numbers<[2], [1], [1], [2], [0, 0, 0, 1, 1, 2], [0], [0]>} : vector<2x8x8xbf16>, vector<2x8x8xbf16>, vector<2x8x8xf32> -> vector<2x8x8xf32>
    "tpu.trace_stop"() : () -> ()
    %219 = tpu.concatenate %149, %172, %195, %218 in 2 : vector<2x8x8xf32>, vector<2x8x8xf32>, vector<2x8x8xf32>, vector<2x8x8xf32> -> vector<2x8x32xf32>
    %220 = arith.addf %219, %120 : vector<2x8x32xf32>
    %221 = vector.shape_cast %220 : vector<2x8x32xf32> to vector<16x32xf32>
    %222 = arith.truncf %221 : vector<16x32xf32> to vector<16x32xbf16>
    %c0_55 = arith.constant 0 : index
    %c0_56 = arith.constant 0 : index
    %c0_57 = arith.constant 0 : index
    %223 = vector.load %arg5[%c0_55, %c0_56, %c0_57] : memref<2x32x32xbf16, #tpu.memory_space<vmem>>, vector<1x32x32xbf16>
    %224 = vector.shape_cast %223 : vector<1x32x32xbf16> to vector<32x32xbf16>
    %cst_58 = arith.constant dense<0.000000e+00> : vector<16x32xf32>
    %225 = tpu.matmul %222, %224, %cst_58 {dimension_numbers = #tpu.dot_dimension_numbers<[1], [0], [0], [1], [0, 0, 1, 1], [], []>} : vector<16x32xbf16>, vector<32x32xbf16>, vector<16x32xf32> -> vector<16x32xf32>
    %c0_59 = arith.constant 0 : index
    %c0_60 = arith.constant 0 : index
    %c0_61 = arith.constant 0 : index
    %226 = vector.load %arg6[%c0_59, %c0_60, %c0_61] : memref<2x1x32xf32, #tpu.memory_space<vmem>>, vector<1x1x32xf32>
    %227 = vector.shape_cast %226 : vector<1x1x32xf32> to vector<1x32xf32>
    %228 = vector.broadcast %227 : vector<1x32xf32> to vector<16x32xf32>
    %229 = arith.addf %225, %228 : vector<16x32xf32>
    %cst_62 = arith.constant 0.000000e+00 : f32
    %230 = vector.broadcast %cst_62 : f32 to vector<16x32xf32>
    %231 = arith.maximumf %229, %230 : vector<16x32xf32>
    %232 = arith.truncf %231 : vector<16x32xf32> to vector<16x32xbf16>
    %c1_63 = arith.constant 1 : index
    %c0_64 = arith.constant 0 : index
    %c0_65 = arith.constant 0 : index
    %233 = vector.load %arg5[%c1_63, %c0_64, %c0_65] : memref<2x32x32xbf16, #tpu.memory_space<vmem>>, vector<1x32x32xbf16>
    %234 = vector.shape_cast %233 : vector<1x32x32xbf16> to vector<32x32xbf16>
    %cst_66 = arith.constant dense<0.000000e+00> : vector<16x32xf32>
    %235 = tpu.matmul %232, %234, %cst_66 {dimension_numbers = #tpu.dot_dimension_numbers<[1], [0], [0], [1], [0, 0, 1, 1], [], []>} : vector<16x32xbf16>, vector<32x32xbf16>, vector<16x32xf32> -> vector<16x32xf32>
    %c1_67 = arith.constant 1 : index
    %c0_68 = arith.constant 0 : index
    %c0_69 = arith.constant 0 : index
    %236 = vector.load %arg6[%c1_67, %c0_68, %c0_69] : memref<2x1x32xf32, #tpu.memory_space<vmem>>, vector<1x1x32xf32>
    %237 = vector.shape_cast %236 : vector<1x1x32xf32> to vector<1x32xf32>
    %238 = vector.broadcast %237 : vector<1x32xf32> to vector<16x32xf32>
    %239 = arith.addf %235, %238 : vector<16x32xf32>
    %cst_70 = arith.constant 0.000000e+00 : f32
    %240 = vector.broadcast %cst_70 : f32 to vector<16x32xf32>
    %241 = arith.maximumf %239, %240 : vector<16x32xf32>
    %242 = arith.truncf %241 : vector<16x32xf32> to vector<16x32xbf16>
    %c0_71 = arith.constant 0 : index
    %c0_72 = arith.constant 0 : index
    %243 = vector.load %arg7[%c0_71, %c0_72] : memref<32x128xbf16, #tpu.memory_space<vmem>>, vector<32x128xbf16>
    %cst_73 = arith.constant dense<0.000000e+00> : vector<16x128xf32>
    %244 = tpu.matmul %242, %243, %cst_73 {dimension_numbers = #tpu.dot_dimension_numbers<[1], [0], [0], [1], [0, 0, 1, 1], [], []>} : vector<16x32xbf16>, vector<32x128xbf16>, vector<16x128xf32> -> vector<16x128xf32>
    %c0_74 = arith.constant 0 : index
    %c0_75 = arith.constant 0 : index
    %245 = vector.load %arg8[%c0_74, %c0_75] : memref<1x128xf32, #tpu.memory_space<vmem>>, vector<1x128xf32>
    %246 = vector.broadcast %245 : vector<1x128xf32> to vector<16x128xf32>
    %247 = arith.addf %244, %246 : vector<16x128xf32>
    %c0_76 = arith.constant 0 : index
    %c0_77 = arith.constant 0 : index
    %248 = vector.load %arg9[%c0_76, %c0_77] : memref<16x128xf32, #tpu.memory_space<vmem>>, vector<16x128xf32>
    tpu.vector_store %arg9[%c0_76, %c0_77], %247 {strides = array<i32>} : memref<16x128xf32, #tpu.memory_space<vmem>>, vector<16x128xf32>,
    return
  }
}

</mosaic_0001>

<bundles_post_ra>
// kernel: tpu_custom_call.1
= control target key start
LH: loop header
LB: loop body
LE: loop exit
PB: predicated region body
PF: predicated region fallthrough
CT: control target
= control target key end

     0   :  { %14 = vsyncpa [#allocation3], 0  ;;  %s3670_s0 = inlined_call_operand.vmem [shape: s32[16,1], index: 0, kind: input, shape index: {}]   ;;  %s3671_s1 = inlined_call_operand.vmem [shape: s32[16,1], index: 1, kind: input, shape index: {}]   ;;  %s3672_s2 = inlined_call_operand.vmem [shape: f32[16,32], index: 2, kind: input, shape index: {}]   ;;  %s3673_s3 = inlined_call_operand.hbm [shape: f32[16,32], index: 3, kind: input, shape index: {}]   ;;  %s3674_s4 = inlined_call_operand.vmem [shape: bf16[2,32,96], index: 4, kind: input, shape index: {}]   ;;  %s3675_s5 = inlined_call_operand.hbm [shape: bf16[2,32,32], index: 5, kind: input, shape index: {}]   ;;  %s3676_s6 = inlined_call_operand.vmem [shape: f32[2,1,32], index: 6, kind: input, shape index: {}]   ;;  %s3677_s7 = inlined_call_operand.hbm [shape: bf16[32,128], index: 7, kind: input, shape index: {}]   ;;  %s3678_s8 = inlined_call_operand.vmem [shape: f32[1,128], index: 8, kind: input, shape index: {}]   ;;  %s3679_s9 = inlined_call_operand.hbm [shape: f32[16,128], index: 9, kind: output, shape index: {}]  }
   0x1   :  { %15 = vsyncpa [#allocation6], 0 }
   0x2   :  { %16 = vsyncpa [#allocation4], 0  ;;  %s3073_s30 = smov [#allocation5]   ;;  %s2979_s13 = scalar_lea.hbm %s3675_s5, 512 }
   0x3   :  { %s42_s10 = sshll.u32 %s3073_s30, 4  ;;  %p2980_p0 = scmp.ne.s32.totalorder %s3675_s5, %s2979_s13  ;;  %s43_s10 = int_to_ptr.vmem [resolvable:$true] %s42_s10 }
   0x4   :  { %p2983_p1 = scmp.lt.u32.totalorder %s2979_s13, %s3675_s5 }
   0x6   :  { %p2985_p2 = pnand %p2983_p1, %p2980_p0 }
   0x8   :  { %2988 = shalt.err (!%p2985_p2)
}
   0x9   :  { %s2989_s18 = scalar_lea.vmem %s43_s10, 512  ;;  %p2994_p4 = scmp.lt.s32.totalorder %s43_s10, %s43_s10 }
   0xa   :  { %p2990_p3 = scmp.ne.s32.totalorder %s43_s10, %s2989_s18  ;;  %p2995_p5 = scmp.lt.s32.totalorder %s2989_s18, %s2989_s18 }
   0xc   :  { %p2996_p6 = por %p2995_p5, %p2994_p4 }
   0xe   :  { %p2997_p7 = pnand %p2996_p6, %p2990_p3 }
  0x10   :  { %3000 = shalt.err (!%p2997_p7)
}
  0x11   :  { %s3074_s19 = smov 64   ;;  %s3075_s20 = smov 4  }
  0x12   :  { %48 = dma.hbm_to_vmem [thread:$0]  %s3675_s5, 512, %s43_s10, [#allocation6], %s3074_s19, %s3074_s19, %s3075_s20  }
  0x13   :  { %s3076_s23 = smov [#allocation2]   ;;  %s3001_s27 = scalar_lea.hbm %s3673_s3, 256 }
  0x14   :  { %s28_s24 = sshll.u32 %s3076_s23, 4  ;;  %p3002_p8 = scmp.ne.s32.totalorder %s3673_s3, %s3001_s27  ;;  %s29_s24 = int_to_ptr.vmem [resolvable:$true] %s28_s24 }
  0x15   :  { %p3005_p9 = scmp.lt.u32.totalorder %s3001_s27, %s3673_s3 }
  0x17   :  { %p3007_p10 = pnand %p3005_p9, %p3002_p8 }
  0x19   :  { %3010 = shalt.err (!%p3007_p10)
}
  0x1a   :  { %s3011_s12 = scalar_lea.vmem %s29_s24, 256  ;;  %p3016_p12 = scmp.lt.s32.totalorder %s29_s24, %s29_s24 }
  0x1b   :  { %p3012_p11 = scmp.ne.s32.totalorder %s29_s24, %s3011_s12  ;;  %p3017_p13 = scmp.lt.s32.totalorder %s3011_s12, %s3011_s12 }
  0x1d   :  { %p3018_p0 = por %p3017_p13, %p3016_p12 }
  0x1f   :  { %p3019_p1 = pnand %p3018_p0, %p3012_p11 }
  0x21   :  { %3022 = shalt.err (!%p3019_p1)
}
  0x22   :  { %s3077_s5 = smov 128   ;;  %s3078_s10 = smov 8  }
  0x23   :  { %34 = dma.hbm_to_vmem [thread:$0]  %s3673_s3, 256, %s29_s24, [#allocation3], %s3077_s5, %s3077_s5, %s3078_s10  }
  0x24   :  { %s3079_s15 = smov [#allocation7]   ;;  %s3023_s21 = scalar_lea.hbm %s3677_s7, 256 }
  0x25   :  { %s56_s16 = sshll.u32 %s3079_s15, 4  ;;  %p3024_p2 = scmp.ne.s32.totalorder %s3677_s7, %s3023_s21  ;;  %s57_s16 = int_to_ptr.vmem [resolvable:$true] %s56_s16 }
  0x26   :  { %p3027_p3 = scmp.lt.u32.totalorder %s3023_s21, %s3677_s7 }
  0x28   :  { %p3029_p4 = pnand %p3027_p3, %p3024_p2 }
  0x2a   :  { %3032 = shalt.err (!%p3029_p4)
}
  0x2b   :  { %s3033_s27 = scalar_lea.vmem %s57_s16, 256  ;;  %p3038_p6 = scmp.lt.s32.totalorder %s57_s16, %s57_s16 }
  0x2c   :  { %p3034_p5 = scmp.ne.s32.totalorder %s57_s16, %s3033_s27  ;;  %p3039_p7 = scmp.lt.s32.totalorder %s3033_s27, %s3033_s27 }
  0x2e   :  { %p3040_p8 = por %p3039_p7, %p3038_p6 }
  0x30   :  { %p3041_p9 = pnand %p3040_p8, %p3034_p5 }
  0x32   :  { %3044 = shalt.err (!%p3041_p9)
}
  0x33   :  { %62 = dma.hbm_to_vmem [thread:$0]  %s3677_s7, 256, %s57_s16, [#allocation6], %s3074_s19, %s3074_s19, %s3075_s20  }
  0x34   :  { %3067 = dma.done.wait [#allocation3], 256  }
  0x35   :  { %3068 = vsyncadd [#allocation3], 4294967040 }
  0x36   :  { %3069 = dma.done.wait [#allocation6], 768  }
  0x37   :  { %3070 = vsyncadd [#allocation6], 4294966528  ;;  %v3080_v0 = vmov 0   ;;  %v91_v1 = vld [vmem:[%s3671_s1] sm:$0xff]  ;;  %v92_v3 = vld [vmem:[%s3671_s1 + $0x8] sm:$0xff]  ;;  %v3081_v8 = vmov 0.0   ;;  %v75_v13 = vlaneseq }
  0x38   :  { %2903 = vset.pattern.permute.xlu0 %v3080_v0  ;;  %2904 = vset.pattern.permute.xlu1 %v3080_v0  ;;  %v77_v2 = vld [vmem:[%s3670_s0] sm:$0xff]  ;;  %v107_v4 = vld [vmem:[#allocation2] sm:$0xff]  ;;  %v108_v5 = vld [vmem:[#allocation2 + $0x8] sm:$0xff]  ;;  %vm109_vm0 = vcmask 130048   ;;  %vm3082_vm5 = vmmov 0   ;;  %vm292_vm6 = vcmask 261120  }
  0x39   :  { %94 = vperm.xlu0 %2903, %v91_v1   ;;  %80 = vperm.xlu1 %2904, %v77_v2   ;;  %v78_v6 = vld [vmem:[%s3670_s0 + $0x8] sm:$0xff]  ;;  %v2870_v7 = vpack.c.bf16 %v108_v5, %v107_v4  ;;  %v105_v9 = vld [vmem:[%s3672_s2] sm:$0xff]  ;;  %v76_v14 = vand.u32 127, %v75_v13  ;;  %s3083_s21 = smov 96   ;;  %vm342_vm7 = vcmask 64512   ;;  %v273_v37 = vshrl.u32 %v75_v13, 7 }
  0x3a   :  { %2638 = vmatprep.subr.bf16.mxu1 %v3081_v8  ;;  %v106_v10 = vld [vmem:[%s3672_s2 + $0x8] sm:$0xff]  ;;  %v2905_v12 = vld [vmem:[%s3674_s4] sm:$0xff]   ;;  %2642 = vmatprep.mubr.msk.bf16.mxu1 %vm3082_vm5, %v3081_v8  ;;  %s3084_s22 = smov 88   ;;  %s3085_s23 = smov 120   ;;  %vm471_vm9 = vcmask 1043456   ;;  %vm1257_vm10 = vcmask 195584  }
  0x3b   :  { %2871 = vmatprep.subr.bf16.mxu0 %v2870_v7  ;;  %v2874_v11 = vpack.c.bf16 %v106_v10, %v105_v9  ;;  %2639 = vmatpush3.bf16.msra.mxu1 %v2905_v12  ;;  %v2906_v23 = vld [vmem:[%s3674_s4 + $0x8] sm:$0xff]   ;;  %vm3260_vm8 = vcmp.le.s32.totalorder %v76_v14, %v273_v37  ;;  %s3086_s25 = smov 56   ;;  %s3087_s26 = smov 80  }
  0x3c   :  { %2873 = vmatpush3.bf16.msra.mxu0 %v2870_v7  ;;  %2640 = vmatprep.subr.bf16.mxu1 %v3081_v8  ;;  %s3088_s27 = smov 112   ;;  %s3089_s3 = smov 48  }
  0x3d   :  { %97 = vperm.xlu0 %2903, %v92_v3   ;;  %83 = vperm.xlu1 %2904, %v78_v6   ;;  %s3090_s24 = smov 72   ;;  %s3091_s28 = smov 104  }
  0x3e   :  { %2875 = vmatprep.subr.bf16.mxu0 %v2874_v11  ;;  %s3092_s29 = smov 40   ;;  %s3093_s30 = smov 16  }
  0x3f   :  { %2641 = vmatpush3.bf16.msra.mxu1 %v2906_v23  ;;  %s3094_s20 = smov 24   ;;  %s3095_s17 = smov [#allocation8]  }
  0x40   :  { %2652 = vmatprep.subr.bf16.mxu1 %v3081_v8  ;;  %s2461_s0 = sshll.u32 %s3095_s17, 4  ;;  %s2462_s0 = int_to_ptr.vmem [resolvable:$true] %s2461_s0 }
  0x41   :  { %p3050_p11 = scmp.lt.s32.totalorder %s2462_s0, %s2462_s0 }
  0xb8   :  { %v95_v15 = vpop.permute.xlu0 %94  ;;  %v81_v16 = vpop.permute.xlu1 %80 }
  0xb9   :  { %vm99_vm1 = vcmp.eq.s32.totalorder %v95_v15, %v76_v14  ;;  %vm85_vm2 = vcmp.eq.s32.totalorder %v81_v16, %v76_v14 }
  0xba   :  { %v2476_v17 = vsel %vm99_vm1, 1.0, %v3081_v8  ;;  %v2474_v19 = vsel %vm85_vm2, 1.0, %v3081_v8 }
  0xbb   :  { %2628 = vmatprep.mubr.msk.f32.mxu0 %vm109_vm0, %v2476_v17 }
  0xbc   :  { %v98_v18 = vpop.permute.xlu0 %97  ;;  %v84_v21 = vpop.permute.xlu1 %83 }
  0xbd   :  { %vm100_vm3 = vcmp.eq.s32.totalorder %v98_v18, %v76_v14  ;;  %vm86_vm4 = vcmp.eq.s32.totalorder %v84_v21, %v76_v14 }
  0xbe   :  { %v2477_v20 = vsel %vm100_vm3, 1.0, %v3081_v8  ;;  %v2475_v22 = vsel %vm86_vm4, 1.0, %v3081_v8 }
  0xbf   :  { %2629 = vmatmul.mubr.msk.f32.vlgmr.msra.gmra.mrb[0].mxu0 %vm109_vm0, %v2477_v20 }
  0xc0   :  { %2877 = vmatpush3.bf16.msra.mxu0 %v2874_v11  ;;  %2635 = vmatprep.mubr.msk.f32.mxu0 %vm109_vm0, %v2474_v19 }
  0xc1   :  { %2646 = vmatprep.subr.bf16.mxu0 %v3081_v8 }
  0xc7   :  { %2636 = vmatmul.mubr.msk.f32.vlgmr.msra.gmra.mrb[0].mxu0 %vm109_vm0, %v2475_v22 }
  0xc8   :  { %2648 = vmatprep.mubr.msk.bf16.mxu0 %vm3082_vm5, %v3081_v8 }
 0x19a   :  { %v3231_v24 = vpop.f32.mrb[0].mxu0 }
 0x19b   :  { %v3233_v25 = vpop.f32.mrb[1].mxu0 }
 0x19c   :  { %v275_v26 = vpack.c.bf16 %v3231_v24, %v3233_v25 }
 0x19e   :  { %2643 = vmatmul.mubr.msk.bf16.vlgmr.msra.gmra.mrb[0].mxu1 %vm292_vm6, %v275_v26 }
 0x19f   :  { %2654 = vmatprep.mubr.msk.bf16.mxu1 %vm3082_vm5, %v3081_v8 }
 0x271   :  { %v330_v27 = vpop.f32.mrb[0].mxu1 }
 0x272   :  { %v3240_v28 = vpack.c.bf16 %v330_v27, %v330_v27  ;;  %v2644_v29 = vpop.f32.mrb[1].mxu1 }
 0x273   :  { %v333_v30 = vpop.f32.mrb[2].mxu1 }
 0x274   :  { %v3242_v31 = vpack.c.bf16 %v333_v30, %v333_v30  ;;  %340 = vrot.lane.b32.xlu0 %v3240_v28, %s3083_s21  ;;  %v2645_v32 = vpop.f32.mrb[3].mxu1 }
 0x276   :  { %390 = vrot.lane.b32.xlu1 %v3242_v31, %s3083_s21 }
 0x2e6   :  { %v341_v33 = vpop.permute.xlu0 %340 }
 0x2e7   :  { %v347_v34 = vsel %vm342_vm7, %v341_v33, 0 }
 0x2e8   :  { %2647 = vmatpush3.bf16.xpose.msra.mxu0 %v347_v34  ;;  %v391_v35 = vpop.permute.xlu1 %390 }
 0x2e9   :  { %v396_v36 = vsel %vm342_vm7, %v391_v35, 0  ;;  %2658 = vmatprep.subr.bf16.mxu0 %v3081_v8 }
 0x2ea   :  { %2653 = vmatpush3.bf16.xpose.msra.mxu1 %v396_v36 }
 0x2eb   :  { %2664 = vmatprep.subr.bf16.mxu1 %v3081_v8 }
 0x2ef   :  { %2649 = vmatmul.mubr.msk.bf16.vlgmr.msra.gmra.mrb[4].mxu0 %vm342_vm7, %v3240_v28 }
 0x2f0   :  { %2660 = vmatprep.mubr.msk.bf16.mxu0 %vm3082_vm5, %v3081_v8 }
 0x2f1   :  { %2655 = vmatmul.mubr.msk.bf16.vlgmr.msra.gmra.mrb[4].mxu1 %vm342_vm7, %v3242_v31 }
 0x2f2   :  { %2666 = vmatprep.mubr.msk.bf16.mxu1 %vm3082_vm5, %v3081_v8 }
 0x3c2   :  { %v383_v39 = vpop.f32.mrb[4].mxu0 }
 0x3c3   :  { %v440_v40 = vsel %vm3260_vm8, %v383_v39, -1e+10  ;;  %v2650_v41 = vpop.f32.mrb[5].mxu0 }
 0x3c4   :  { %v386_v42 = vpop.f32.mrb[6].mxu0  ;;  %v432_v43 = vpop.f32.mrb[4].mxu1  ;;  %v442_v44 = vsel %vm342_vm7, %v440_v40, -inf }
 0x3c5   :  { %v441_v45 = vsel %vm3260_vm8, %v432_v43, -1e+10  ;;  %443 = vmax.xlane.f32.xlu0 %v442_v44  ;;  %v2651_v46 = vpop.f32.mrb[7].mxu0  ;;  %v2656_v47 = vpop.f32.mrb[5].mxu1 }
 0x3c6   :  { %v435_v48 = vpop.f32.mrb[6].mxu1  ;;  %v445_v49 = vsel %vm342_vm7, %v441_v45, -inf }
 0x3c7   :  { %446 = vmax.xlane.f32.xlu1 %v445_v49  ;;  %v2657_v50 = vpop.f32.mrb[7].mxu1 }
 0x3d8   :  { %466 = vrot.lane.b32.xlu1 %v3240_v28, %s3074_s19 }
 0x3dc   :  { %565 = vrot.lane.b32.xlu1 %v3240_v28, %s3084_s22 }
 0x3e0   :  { %615 = vrot.lane.b32.xlu1 %v3242_v31, %s3084_s22 }
 0x3e4   :  { %613 = vrot.lane.b32.xlu1 %v3242_v31, %s3085_s23 }
 0x452   :  { %v444_v51 = vpop.xlane.xlu0 %443 }
 0x453   :  { %v448_v52 = vsub.f32 %v440_v40, %v444_v51 }
 0x454   :  { %v447_v53 = vpop.xlane.xlu1 %446 }
 0x455   :  { %v450_v54 = vmul.f32 1.442695, %v448_v52  ;;  %v449_v55 = vsub.f32 %v441_v45, %v447_v53 }
 0x457   :  { %2915 = vpow2.f32 %v450_v54  ;;  %v452_v56 = vmul.f32 1.442695, %v449_v55 }
 0x458   :  { %v467_v57 = vpop.permute.xlu1 %466 }
 0x459   :  { %2917 = vpow2.f32 %v452_v56  ;;  %v473_v58 = vsel %vm471_vm9, %v467_v57, 0 }
 0x45a   :  { %2659 = vmatpush3.bf16.msra.mxu0 %v473_v58 }
 0x45b   :  { %2670 = vmatprep.subr.bf16.mxu0 %v3081_v8 }
 0x45c   :  { %v566_v4 = vpop.permute.xlu1 %565 }
 0x45d   :  { %v571_v9 = vsel %vm342_vm7, %v566_v4, 0 }
 0x460   :  { %v616_v11 = vpop.permute.xlu1 %615 }
 0x461   :  { %v2916_v59 = vpop.eup %2915  ;;  %v621_v13 = vsel %vm342_vm7, %v616_v11, 0 }
 0x462   :  { %v454_v60 = vsel %vm342_vm7, %v2916_v59, 0.0 }
 0x463   :  { %v2918_v61 = vpop.eup %2917  ;;  %455 = vadd.xlane.f32.xlu0 %v454_v60 }
 0x464   :  { %v457_v62 = vsel %vm342_vm7, %v2918_v61, 0.0  ;;  %v614_v15 = vpop.permute.xlu1 %613 }
 0x467   :  { %458 = vadd.xlane.f32.xlu0 %v457_v62 }
 0x47d   :  { %515 = vrot.lane.b32.xlu0 %v3242_v31, %s3074_s19 }
 0x481   :  { %563 = vrot.lane.b32.xlu0 %v3240_v28, %s3085_s23 }
 0x4f0   :  { %v456_v63 = vpop.xlane.xlu0 %455 }
 0x4f1   :  { %2919 = vrcp.f32 %v456_v63 }
 0x4f4   :  { %v459_v0 = vpop.xlane.xlu0 %458 }
 0x4f5   :  { %2921 = vrcp.f32 %v459_v0 }
 0x4f8   :  { %v516_v1 = vpop.permute.xlu0 %515 }
 0x4f9   :  { %v521_v2 = vsel %vm471_vm9, %v516_v1, 0 }
 0x4fa   :  { %2665 = vmatpush3.bf16.msra.mxu1 %v521_v2 }
 0x4fb   :  { %v2920_v3 = vpop.eup %2919  ;;  %2676 = vmatprep.subr.bf16.mxu1 %v3081_v8 }
 0x4fc   :  { %v462_v5 = vmul.f32 %v2920_v3, %v2916_v59  ;;  %v564_v14 = vpop.permute.xlu0 %563 }
 0x4fe   :  { %v464_v6 = vpack.c.bf16 %v462_v5, %v462_v5 }
 0x4ff   :  { %v2922_v7 = vpop.eup %2921 }
 0x500   :  { %v463_v10 = vmul.f32 %v2922_v7, %v2918_v61  ;;  %2661 = vmatmul.mubr.msk.bf16.vlgmr.msra.gmra.mrb[8].mxu0 %vm342_vm7, %v464_v6 }
 0x501   :  { %2671 = vmatpush3.bf16.xpose.msra.mxu0 %v571_v9  ;;  %2672 = vmatprep.mubr.msk.bf16.mxu0 %vm3082_vm5, %v3081_v8 }
 0x502   :  { %v465_v12 = vpack.c.bf16 %v463_v10, %v463_v10  ;;  %2682 = vmatprep.subr.bf16.mxu0 %v3081_v8 }
 0x504   :  { %2667 = vmatmul.mubr.msk.bf16.vlgmr.msra.gmra.mrb[8].mxu1 %vm342_vm7, %v465_v12 }
 0x505   :  { %2677 = vmatpush3.bf16.xpose.msra.mxu1 %v621_v13  ;;  %2678 = vmatprep.mubr.msk.bf16.mxu1 %vm3082_vm5, %v3081_v8 }
 0x506   :  { %2688 = vmatprep.subr.bf16.mxu1 %v3081_v8 }
 0x508   :  { %2673 = vmatmul.mubr.msk.bf16.vlgmr.msra.gmra.mrb[12].mxu0 %vm342_vm7, %v564_v14 }
 0x509   :  { %2684 = vmatprep.mubr.msk.bf16.mxu0 %vm3082_vm5, %v3081_v8 }
 0x50c   :  { %2679 = vmatmul.mubr.msk.bf16.vlgmr.msra.gmra.mrb[12].mxu1 %vm342_vm7, %v614_v15 }
 0x50d   :  { %2690 = vmatprep.mubr.msk.bf16.mxu1 %vm3082_vm5, %v3081_v8 }
 0x5d3   :  { %v3304_v16 = vpop.f32.mrb[8].mxu0 }
 0x5d4   :  { %v2662_v17 = vpop.f32.mrb[9].mxu0 }
 0x5d5   :  { %v512_v18 = vpop.f32.mrb[10].mxu0 }
 0x5d6   :  { %v2663_v19 = vpop.f32.mrb[11].mxu0 }
 0x5d7   :  { %v3306_v20 = vpop.f32.mrb[8].mxu1 }
 0x5d8   :  { %v2668_v21 = vpop.f32.mrb[9].mxu1 }
 0x5d9   :  { %v560_v22 = vpop.f32.mrb[10].mxu1 }
 0x5da   :  { %v2669_v23 = vpop.f32.mrb[11].mxu1 }
 0x5db   :  { %v607_v26 = vpop.f32.mrb[12].mxu0 }
 0x5dc   :  { %v663_v27 = vsel %vm3260_vm8, %v607_v26, -1e+10  ;;  %v2674_v29 = vpop.f32.mrb[13].mxu0 }
 0x5dd   :  { %v610_v30 = vpop.f32.mrb[14].mxu0  ;;  %v665_v32 = vsel %vm342_vm7, %v663_v27, -inf }
 0x5de   :  { %666 = vmax.xlane.f32.xlu0 %v665_v32  ;;  %v2675_v33 = vpop.f32.mrb[15].mxu0 }
 0x5df   :  { %v657_v34 = vpop.f32.mrb[12].mxu1 }
 0x5e0   :  { %v664_v35 = vsel %vm3260_vm8, %v657_v34, -1e+10  ;;  %v2680_v36 = vpop.f32.mrb[13].mxu1 }
 0x5e1   :  { %v660_v37 = vpop.f32.mrb[14].mxu1  ;;  %v668_v39 = vsel %vm342_vm7, %v664_v35, -inf }
 0x5e2   :  { %669 = vmax.xlane.f32.xlu1 %v668_v39  ;;  %v2681_v40 = vpop.f32.mrb[15].mxu1 }
 0x5f3   :  { %689 = vrot.lane.b32.xlu1 %v3240_v28, %s3086_s25 }
 0x5f7   :  { %787 = vrot.lane.b32.xlu1 %v3240_v28, %s3087_s26 }
 0x5fb   :  { %837 = vrot.lane.b32.xlu1 %v3242_v31, %s3087_s26 }
 0x5ff   :  { %835 = vrot.lane.b32.xlu1 %v3242_v31, %s3088_s27 }
 0x66b   :  { %v667_v41 = vpop.xlane.xlu0 %666 }
 0x66c   :  { %v671_v42 = vsub.f32 %v663_v27, %v667_v41 }
 0x66e   :  { %v673_v43 = vmul.f32 1.442695, %v671_v42 }
 0x66f   :  { %v670_v44 = vpop.xlane.xlu1 %669 }
 0x670   :  { %2923 = vpow2.f32 %v673_v43  ;;  %v672_v45 = vsub.f32 %v664_v35, %v670_v44 }
 0x672   :  { %v675_v46 = vmul.f32 1.442695, %v672_v45 }
 0x673   :  { %v690_v47 = vpop.permute.xlu1 %689 }
 0x674   :  { %2925 = vpow2.f32 %v675_v46  ;;  %v695_v48 = vsel %vm471_vm9, %v690_v47, 0 }
 0x675   :  { %2683 = vmatpush3.bf16.msra.mxu0 %v695_v48 }
 0x676   :  { %2694 = vmatprep.subr.bf16.mxu0 %v3081_v8 }
 0x677   :  { %v788_v58 = vpop.permute.xlu1 %787 }
 0x678   :  { %v793_v62 = vsel %vm342_vm7, %v788_v58, 0 }
 0x67a   :  { %v2924_v49 = vpop.eup %2923 }
 0x67b   :  { %v677_v50 = vsel %vm342_vm7, %v2924_v49, 0.0  ;;  %v838_v0 = vpop.permute.xlu1 %837 }
 0x67c   :  { %678 = vadd.xlane.f32.xlu0 %v677_v50  ;;  %v843_v2 = vsel %vm342_vm7, %v838_v0, 0 }
 0x67e   :  { %v2926_v51 = vpop.eup %2925 }
 0x67f   :  { %v680_v52 = vsel %vm342_vm7, %v2926_v51, 0.0  ;;  %v836_v4 = vpop.permute.xlu1 %835 }
 0x680   :  { %681 = vadd.xlane.f32.xlu0 %v680_v52 }
 0x696   :  { %737 = vrot.lane.b32.xlu0 %v3242_v31, %s3086_s25 }
 0x69a   :  { %785 = vrot.lane.b32.xlu0 %v3240_v28, %s3088_s27 }
 0x709   :  { %v679_v53 = vpop.xlane.xlu0 %678 }
 0x70a   :  { %2927 = vrcp.f32 %v679_v53 }
 0x70d   :  { %v682_v54 = vpop.xlane.xlu0 %681 }
 0x70e   :  { %2929 = vrcp.f32 %v682_v54 }
 0x711   :  { %v738_v55 = vpop.permute.xlu0 %737 }
 0x712   :  { %v743_v56 = vsel %vm471_vm9, %v738_v55, 0 }
 0x713   :  { %2689 = vmatpush3.bf16.msra.mxu1 %v743_v56 }
 0x714   :  { %v2928_v57 = vpop.eup %2927  ;;  %2700 = vmatprep.subr.bf16.mxu1 %v3081_v8 }
 0x715   :  { %v685_v59 = vmul.f32 %v2928_v57, %v2924_v49  ;;  %v786_v3 = vpop.permute.xlu0 %785 }
 0x717   :  { %v687_v60 = vpack.c.bf16 %v685_v59, %v685_v59 }
 0x718   :  { %v2930_v61 = vpop.eup %2929 }
 0x719   :  { %v686_v63 = vmul.f32 %v2930_v61, %v2926_v51  ;;  %2685 = vmatmul.mubr.msk.bf16.vlgmr.msra.gmra.mrb[16].mxu0 %vm342_vm7, %v687_v60 }
 0x71a   :  { %2695 = vmatpush3.bf16.xpose.msra.mxu0 %v793_v62  ;;  %2696 = vmatprep.mubr.msk.bf16.mxu0 %vm3082_vm5, %v3081_v8 }
 0x71b   :  { %v688_v1 = vpack.c.bf16 %v686_v63, %v686_v63  ;;  %2706 = vmatprep.subr.bf16.mxu0 %v3081_v8 }
 0x71d   :  { %2691 = vmatmul.mubr.msk.bf16.vlgmr.msra.gmra.mrb[16].mxu1 %vm342_vm7, %v688_v1 }
 0x71e   :  { %2701 = vmatpush3.bf16.xpose.msra.mxu1 %v843_v2  ;;  %2702 = vmatprep.mubr.msk.bf16.mxu1 %vm3082_vm5, %v3081_v8 }
 0x71f   :  { %2712 = vmatprep.subr.bf16.mxu1 %v3081_v8 }
 0x721   :  { %2697 = vmatmul.mubr.msk.bf16.vlgmr.msra.gmra.mrb[20].mxu0 %vm342_vm7, %v786_v3 }
 0x722   :  { %2708 = vmatprep.mubr.msk.bf16.mxu0 %vm3082_vm5, %v3081_v8 }
 0x725   :  { %2703 = vmatmul.mubr.msk.bf16.vlgmr.msra.gmra.mrb[20].mxu1 %vm342_vm7, %v836_v4 }
 0x726   :  { %2714 = vmatprep.mubr.msk.bf16.mxu1 %vm3082_vm5, %v3081_v8 }
 0x7ec   :  { %v3348_v5 = vpop.f32.mrb[16].mxu0 }
 0x7ed   :  { %v2686_v6 = vpop.f32.mrb[17].mxu0 }
 0x7ee   :  { %v734_v7 = vpop.f32.mrb[18].mxu0 }
 0x7ef   :  { %v2687_v9 = vpop.f32.mrb[19].mxu0 }
 0x7f0   :  { %v3350_v10 = vpop.f32.mrb[16].mxu1 }
 0x7f1   :  { %v2692_v11 = vpop.f32.mrb[17].mxu1 }
 0x7f2   :  { %v782_v12 = vpop.f32.mrb[18].mxu1 }
 0x7f3   :  { %v2693_v13 = vpop.f32.mrb[19].mxu1 }
 0x7f4   :  { %v829_v14 = vpop.f32.mrb[20].mxu0 }
 0x7f5   :  { %v885_v15 = vsel %vm3260_vm8, %v829_v14, -1e+10  ;;  %v2698_v17 = vpop.f32.mrb[21].mxu0 }
 0x7f6   :  { %v832_v18 = vpop.f32.mrb[22].mxu0  ;;  %v887_v19 = vsel %vm342_vm7, %v885_v15, -inf }
 0x7f7   :  { %888 = vmax.xlane.f32.xlu0 %v887_v19  ;;  %v2699_v21 = vpop.f32.mrb[23].mxu0 }
 0x7f8   :  { %v879_v22 = vpop.f32.mrb[20].mxu1 }
 0x7f9   :  { %v886_v23 = vsel %vm3260_vm8, %v879_v22, -1e+10  ;;  %v2704_v26 = vpop.f32.mrb[21].mxu1 }
 0x7fa   :  { %v882_v27 = vpop.f32.mrb[22].mxu1  ;;  %v890_v29 = vsel %vm342_vm7, %v886_v23, -inf }
 0x7fb   :  { %891 = vmax.xlane.f32.xlu1 %v890_v29  ;;  %v2705_v30 = vpop.f32.mrb[23].mxu1 }
 0x80c   :  { %911 = vrot.lane.b32.xlu1 %v3240_v28, %s3089_s3 }
 0x810   :  { %1009 = vrot.lane.b32.xlu1 %v3240_v28, %s3090_s24 }
 0x814   :  { %1059 = vrot.lane.b32.xlu1 %v3242_v31, %s3090_s24 }
 0x818   :  { %1057 = vrot.lane.b32.xlu1 %v3242_v31, %s3091_s28 }
 0x884   :  { %v889_v32 = vpop.xlane.xlu0 %888 }
 0x885   :  { %v893_v33 = vsub.f32 %v885_v15, %v889_v32 }
 0x887   :  { %v895_v34 = vmul.f32 1.442695, %v893_v33 }
 0x888   :  { %v892_v35 = vpop.xlane.xlu1 %891 }
 0x889   :  { %2931 = vpow2.f32 %v895_v34  ;;  %v894_v36 = vsub.f32 %v886_v23, %v892_v35 }
 0x88b   :  { %v897_v37 = vmul.f32 1.442695, %v894_v36 }
 0x88c   :  { %v912_v39 = vpop.permute.xlu1 %911 }
 0x88d   :  { %2933 = vpow2.f32 %v897_v37  ;;  %v917_v40 = vsel %vm471_vm9, %v912_v39, 0 }
 0x88e   :  { %2707 = vmatpush3.bf16.msra.mxu0 %v917_v40 }
 0x88f   :  { %2718 = vmatprep.subr.bf16.mxu0 %v3081_v8 }
 0x890   :  { %v1010_v50 = vpop.permute.xlu1 %1009 }
 0x891   :  { %v1015_v54 = vsel %vm342_vm7, %v1010_v50, 0 }
 0x893   :  { %v2932_v41 = vpop.eup %2931 }
 0x894   :  { %v899_v42 = vsel %vm342_vm7, %v2932_v41, 0.0  ;;  %v1060_v56 = vpop.permute.xlu1 %1059 }
 0x895   :  { %900 = vadd.xlane.f32.xlu0 %v899_v42  ;;  %v1065_v58 = vsel %vm342_vm7, %v1060_v56, 0 }
 0x897   :  { %v2934_v43 = vpop.eup %2933 }
 0x898   :  { %v902_v44 = vsel %vm342_vm7, %v2934_v43, 0.0  ;;  %v1058_v60 = vpop.permute.xlu1 %1057 }
 0x899   :  { %903 = vadd.xlane.f32.xlu0 %v902_v44 }
 0x8af   :  { %959 = vrot.lane.b32.xlu0 %v3242_v31, %s3089_s3 }
 0x8b3   :  { %1007 = vrot.lane.b32.xlu0 %v3240_v28, %s3091_s28 }
 0x922   :  { %v901_v45 = vpop.xlane.xlu0 %900 }
 0x923   :  { %2935 = vrcp.f32 %v901_v45  ;;  %v2907_v45 = vld [vmem:[%s3674_s4 + $0x10] sm:$0xff]  }
 0x926   :  { %v904_v46 = vpop.xlane.xlu0 %903 }
 0x927   :  { %2937 = vrcp.f32 %v904_v46  ;;  %v2908_v46 = vld [vmem:[%s3674_s4 + $0x18] sm:$0xff]  }
 0x92a   :  { %v960_v47 = vpop.permute.xlu0 %959 }
 0x92b   :  { %v965_v48 = vsel %vm471_vm9, %v960_v47, 0 }
 0x92c   :  { %2713 = vmatpush3.bf16.msra.mxu1 %v965_v48 }
 0x92d   :  { %v2936_v49 = vpop.eup %2935  ;;  %2724 = vmatprep.subr.bf16.mxu1 %v3081_v8 }
 0x92e   :  { %v907_v51 = vmul.f32 %v2936_v49, %v2932_v41  ;;  %v1008_v59 = vpop.permute.xlu0 %1007 }
 0x930   :  { %v909_v52 = vpack.c.bf16 %v907_v51, %v907_v51 }
 0x931   :  { %v2938_v53 = vpop.eup %2937 }
 0x932   :  { %v908_v55 = vmul.f32 %v2938_v53, %v2934_v43  ;;  %2709 = vmatmul.mubr.msk.bf16.vlgmr.msra.gmra.mrb[24].mxu0 %vm342_vm7, %v909_v52 }
 0x933   :  { %2719 = vmatpush3.bf16.xpose.msra.mxu0 %v1015_v54  ;;  %2720 = vmatprep.mubr.msk.bf16.mxu0 %vm3082_vm5, %v3081_v8 }
 0x934   :  { %v910_v57 = vpack.c.bf16 %v908_v55, %v908_v55  ;;  %2730 = vmatprep.subr.bf16.mxu0 %v3081_v8 }
 0x936   :  { %2715 = vmatmul.mubr.msk.bf16.vlgmr.msra.gmra.mrb[24].mxu1 %vm342_vm7, %v910_v57 }
 0x937   :  { %2725 = vmatpush3.bf16.xpose.msra.mxu1 %v1065_v58  ;;  %2726 = vmatprep.mubr.msk.bf16.mxu1 %vm3082_vm5, %v3081_v8 }
 0x938   :  { %2736 = vmatprep.subr.bf16.mxu1 %v3081_v8 }
 0x93a   :  { %2721 = vmatmul.mubr.msk.bf16.vlgmr.msra.gmra.mrb[28].mxu0 %vm342_vm7, %v1008_v59 }
 0x93b   :  { %2732 = vmatprep.mubr.msk.bf16.mxu0 %vm3082_vm5, %v3081_v8 }
 0x93e   :  { %2727 = vmatmul.mubr.msk.bf16.vlgmr.msra.gmra.mrb[28].mxu1 %vm342_vm7, %v1058_v60 }
 0x93f   :  { %2738 = vmatprep.mubr.msk.bf16.mxu1 %vm3082_vm5, %v3081_v8 }
 0xa05   :  { %v953_v61 = vpop.f32.mrb[24].mxu0 }
 0xa06   :  { %v2710_v62 = vpop.f32.mrb[25].mxu0 }
 0xa07   :  { %v956_v63 = vpop.f32.mrb[26].mxu0 }
 0xa08   :  { %v2711_v0 = vpop.f32.mrb[27].mxu0 }
 0xa09   :  { %v1001_v1 = vpop.f32.mrb[24].mxu1 }
 0xa0a   :  { %v2716_v2 = vpop.f32.mrb[25].mxu1 }
 0xa0b   :  { %v1004_v3 = vpop.f32.mrb[26].mxu1 }
 0xa0c   :  { %v2717_v4 = vpop.f32.mrb[27].mxu1 }
 0xa0d   :  { %v1051_v6 = vpop.f32.mrb[28].mxu0 }
 0xa0e   :  { %v1107_v7 = vsel %vm3260_vm8, %v1051_v6, -1e+10  ;;  %v2722_v9 = vpop.f32.mrb[29].mxu0 }
 0xa0f   :  { %v1054_v11 = vpop.f32.mrb[30].mxu0  ;;  %v1109_v12 = vsel %vm342_vm7, %v1107_v7, -inf }
 0xa10   :  { %1110 = vmax.xlane.f32.xlu0 %v1109_v12  ;;  %v2723_v13 = vpop.f32.mrb[31].mxu0 }
 0xa11   :  { %v1101_v14 = vpop.f32.mrb[28].mxu1 }
 0xa12   :  { %v1108_v15 = vsel %vm3260_vm8, %v1101_v14, -1e+10  ;;  %v2728_v17 = vpop.f32.mrb[29].mxu1 }
 0xa13   :  { %v1104_v18 = vpop.f32.mrb[30].mxu1  ;;  %v1112_v19 = vsel %vm342_vm7, %v1108_v15, -inf }
 0xa14   :  { %1113 = vmax.xlane.f32.xlu1 %v1112_v19  ;;  %v2729_v21 = vpop.f32.mrb[31].mxu1 }
 0xa25   :  { %1133 = vrot.lane.b32.xlu1 %v3240_v28, %s3092_s29 }
 0xa29   :  { %1231 = vrot.lane.b32.xlu1 %v3348_v5, %s3078_s10 }
 0xa2d   :  { %1233 = vrot.lane.b32.xlu1 %v3350_v10, %s3078_s10 }
 0xa31   :  { %1241 = vrot.lane.b32.xlu1 %v1001_v1, %s3093_s30 }
 0xa9d   :  { %v1111_v22 = vpop.xlane.xlu0 %1110 }
 0xa9e   :  { %v1115_v23 = vsub.f32 %v1107_v7, %v1111_v22 }
 0xaa0   :  { %v1117_v26 = vmul.f32 1.442695, %v1115_v23 }
 0xaa1   :  { %v1114_v27 = vpop.xlane.xlu1 %1113 }
 0xaa2   :  { %2939 = vpow2.f32 %v1117_v26  ;;  %v1116_v29 = vsub.f32 %v1108_v15, %v1114_v27 }
 0xaa4   :  { %v1119_v30 = vmul.f32 1.442695, %v1116_v29 }
 0xaa5   :  { %v1134_v32 = vpop.permute.xlu1 %1133 }
 0xaa6   :  { %2941 = vpow2.f32 %v1119_v30  ;;  %v1139_v28 = vsel %vm471_vm9, %v1134_v32, 0 }
 0xaa7   :  { %2731 = vmatpush3.bf16.msra.mxu0 %v1139_v28 }
 0xaa8   :  { %2742 = vmatprep.subr.bf16.mxu0 %v3081_v8 }
 0xaa9   :  { %v1232_v55 = vpop.permute.xlu1 %1231 }
 0xaaa   :  { %v1253_v58 = vsel %vm342_vm7, %v3304_v16, %v1232_v55 }
 0xaac   :  { %v2940_v5 = vpop.eup %2939 }
 0xaad   :  { %v1121_v10 = vsel %vm342_vm7, %v2940_v5, 0.0  ;;  %v1234_v56 = vpop.permute.xlu1 %1233 }
 0xaae   :  { %1122 = vadd.xlane.f32.xlu0 %v1121_v10  ;;  %v1254_v0 = vsel %vm342_vm7, %v3306_v20, %v1234_v56 }
 0xab0   :  { %v2942_v33 = vpop.eup %2941 }
 0xab1   :  { %v1124_v34 = vsel %vm342_vm7, %v2942_v33, 0.0  ;;  %v1242_v59 = vpop.permute.xlu1 %1241 }
 0xab2   :  { %1125 = vadd.xlane.f32.xlu0 %v1124_v34  ;;  %v1256_v1 = vsel %vm109_vm0, %v1254_v0, %v1242_v59 }
 0xac8   :  { %1181 = vrot.lane.b32.xlu0 %v3242_v31, %s3092_s29 }
 0xacc   :  { %1239 = vrot.lane.b32.xlu0 %v953_v61, %s3093_s30 }
 0xb3b   :  { %v1123_v35 = vpop.xlane.xlu0 %1122 }
 0xb3c   :  { %2943 = vrcp.f32 %v1123_v35 }
 0xb3f   :  { %v1126_v36 = vpop.xlane.xlu0 %1125 }
 0xb40   :  { %2945 = vrcp.f32 %v1126_v36 }
 0xb43   :  { %v1182_v37 = vpop.permute.xlu0 %1181 }
 0xb44   :  { %v1187_v39 = vsel %vm471_vm9, %v1182_v37, 0 }
 0xb45   :  { %2737 = vmatpush3.bf16.msra.mxu1 %v1187_v39 }
 0xb46   :  { %v2944_v40 = vpop.eup %2943  ;;  %2750 = vmatprep.subr.bf16.mxu1 %v3081_v8 }
 0xb47   :  { %v1129_v41 = vmul.f32 %v2944_v40, %v2940_v5  ;;  %v1240_v57 = vpop.permute.xlu0 %1239 }
 0xb48   :  { %v1255_v60 = vsel %vm109_vm0, %v1253_v58, %v1240_v57 }
 0xb49   :  { %v1131_v42 = vpack.c.bf16 %v1129_v41, %v1129_v41 }
 0xb4a   :  { %v2946_v43 = vpop.eup %2945 }
 0xb4b   :  { %v1130_v44 = vmul.f32 %v2946_v43, %v2942_v33  ;;  %2733 = vmatmul.mubr.msk.bf16.vlgmr.msra.gmra.mrb[32].mxu0 %vm342_vm7, %v1131_v42 }
 0xb4c   :  { %2746 = vmatprep.mubr.msk.bf16.mxu0 %vm3082_vm5, %v3081_v8  ;;  %2743 = vmatpush3.bf16.msra.mxu0 %v2907_v45 }
 0xb4d   :  { %v1132_v31 = vpack.c.bf16 %v1130_v44, %v1130_v44  ;;  %2744 = vmatprep.subr.bf16.mxu0 %v3081_v8 }
 0xb4f   :  { %2739 = vmatmul.mubr.msk.bf16.vlgmr.msra.gmra.mrb[32].mxu1 %vm342_vm7, %v1132_v31 }
 0xb50   :  { %2752 = vmatprep.mubr.msk.bf16.mxu1 %vm3082_vm5, %v3081_v8  ;;  %2745 = vmatpush3.bf16.msra.mxu0 %v2908_v46 }
 0xb51   :  { %2756 = vmatprep.subr.bf16.mxu0 %v3081_v8 }
 0xc1e   :  { %v1175_v47 = vpop.f32.mrb[32].mxu0 }
 0xc1f   :  { %1247 = vrot.lane.b32.xlu0 %v1175_v47, %s3094_s20  ;;  %v2734_v48 = vpop.f32.mrb[33].mxu0 }
 0xc20   :  { %v1178_v49 = vpop.f32.mrb[34].mxu0 }
 0xc21   :  { %v2735_v50 = vpop.f32.mrb[35].mxu0 }
 0xc22   :  { %v1223_v51 = vpop.f32.mrb[32].mxu1 }
 0xc23   :  { %1249 = vrot.lane.b32.xlu1 %v1223_v51, %s3094_s20  ;;  %v2740_v52 = vpop.f32.mrb[33].mxu1 }
 0xc24   :  { %v1226_v53 = vpop.f32.mrb[34].mxu1 }
 0xc25   :  { %v2741_v54 = vpop.f32.mrb[35].mxu1 }
 0xc91   :  { %v1248_v61 = vpop.permute.xlu0 %1247 }
 0xc92   :  { %v1258_v62 = vsel %vm1257_vm10, %v1255_v60, %v1248_v61 }
 0xc93   :  { %v3435_v63 = vadd.f32 %v1258_v62, %v3233_v25 }
 0xc95   :  { %v1250_v2 = vpop.permute.xlu1 %1249 }
 0xc96   :  { %v1259_v3 = vsel %vm1257_vm10, %v1256_v1, %v1250_v2 }
 0xc97   :  { %v3442_v4 = vadd.f32 %v3231_v24, %v1259_v3 }
 0xc99   :  { %v1262_v16 = vpack.c.bf16 %v3442_v4, %v3435_v63 }
 0xc9b   :  { %2747 = vmatmul.mubr.msk.bf16.vlgmr.msra.gmra.mrb[36].mxu0 %vm292_vm6, %v1262_v16 }
 0xc9c   :  { %2758 = vmatprep.mubr.msk.bf16.mxu0 %vm3082_vm5, %v3081_v8 }
 0xd6e   :  { %v1317_v25 = vpop.f32.mrb[36].mxu0 }
 0xd6f   :  { %v3449_v6 = vpack.c.bf16 %v1317_v25, %v1317_v25  ;;  %v2748_v20 = vpop.f32.mrb[37].mxu0 }
 0xd70   :  { %v1320_v7 = vpop.f32.mrb[38].mxu0 }
 0xd71   :  { %v3451_v9 = vpack.c.bf16 %v1320_v7, %v1320_v7  ;;  %1327 = vrot.lane.b32.xlu0 %v3449_v6, %s3083_s21  ;;  %v2749_v24 = vpop.f32.mrb[39].mxu0 }
 0xd73   :  { %1376 = vrot.lane.b32.xlu1 %v3451_v9, %s3083_s21 }
 0xde3   :  { %v1328_v11 = vpop.permute.xlu0 %1327 }
 0xde4   :  { %v1333_v12 = vsel %vm342_vm7, %v1328_v11, 0 }
 0xde5   :  { %2751 = vmatpush3.bf16.xpose.msra.mxu1 %v1333_v12  ;;  %v1377_v13 = vpop.permute.xlu1 %1376 }
 0xde6   :  { %v1382_v14 = vsel %vm342_vm7, %v1377_v13, 0  ;;  %2762 = vmatprep.subr.bf16.mxu1 %v3081_v8 }
 0xde7   :  { %2757 = vmatpush3.bf16.xpose.msra.mxu0 %v1382_v14 }
 0xde8   :  { %2768 = vmatprep.subr.bf16.mxu0 %v3081_v8 }
 0xdec   :  { %2753 = vmatmul.mubr.msk.bf16.vlgmr.msra.gmra.mrb[36].mxu1 %vm342_vm7, %v3449_v6 }
 0xded   :  { %2764 = vmatprep.mubr.msk.bf16.mxu1 %vm3082_vm5, %v3081_v8 }
 0xdee   :  { %2759 = vmatmul.mubr.msk.bf16.vlgmr.msra.gmra.mrb[40].mxu0 %vm342_vm7, %v3451_v9 }
 0xdef   :  { %2770 = vmatprep.mubr.msk.bf16.mxu0 %vm3082_vm5, %v3081_v8 }
 0xebf   :  { %v1369_v15 = vpop.f32.mrb[36].mxu1 }
 0xec0   :  { %v1424_v17 = vsel %vm3260_vm8, %v1369_v15, -1e+10  ;;  %v2754_v18 = vpop.f32.mrb[37].mxu1 }
 0xec1   :  { %v1372_v19 = vpop.f32.mrb[38].mxu1  ;;  %v1418_v21 = vpop.f32.mrb[40].mxu0  ;;  %v1426_v22 = vsel %vm342_vm7, %v1424_v17, -inf }
 0xec2   :  { %v1425_v23 = vsel %vm3260_vm8, %v1418_v21, -1e+10  ;;  %v2760_v26 = vpop.f32.mrb[41].mxu0  ;;  %1427 = vmax.xlane.f32.xlu0 %v1426_v22  ;;  %v2755_v27 = vpop.f32.mrb[39].mxu1 }
 0xec3   :  { %v1421_v29 = vpop.f32.mrb[42].mxu0  ;;  %v1429_v30 = vsel %vm342_vm7, %v1425_v23, -inf }
 0xec4   :  { %1430 = vmax.xlane.f32.xlu1 %v1429_v30  ;;  %v2761_v32 = vpop.f32.mrb[43].mxu0 }
 0xed5   :  { %1450 = vrot.lane.b32.xlu1 %v3449_v6, %s3074_s19 }
 0xed9   :  { %1548 = vrot.lane.b32.xlu1 %v3449_v6, %s3084_s22 }
 0xedd   :  { %1598 = vrot.lane.b32.xlu1 %v3451_v9, %s3084_s22 }
 0xee1   :  { %1596 = vrot.lane.b32.xlu1 %v3451_v9, %s3085_s23 }
 0xf4f   :  { %v1428_v28 = vpop.xlane.xlu0 %1427 }
 0xf50   :  { %v1432_v5 = vsub.f32 %v1424_v17, %v1428_v28 }
 0xf51   :  { %v1431_v10 = vpop.xlane.xlu1 %1430 }
 0xf52   :  { %v1434_v33 = vmul.f32 1.442695, %v1432_v5  ;;  %v1433_v34 = vsub.f32 %v1425_v23, %v1431_v10 }
 0xf54   :  { %2947 = vpow2.f32 %v1434_v33  ;;  %v1436_v35 = vmul.f32 1.442695, %v1433_v34 }
 0xf55   :  { %v1451_v36 = vpop.permute.xlu1 %1450 }
 0xf56   :  { %2949 = vpow2.f32 %v1436_v35  ;;  %v1456_v37 = vsel %vm471_vm9, %v1451_v36, 0 }
 0xf57   :  { %2763 = vmatpush3.bf16.msra.mxu1 %v1456_v37 }
 0xf58   :  { %2774 = vmatprep.subr.bf16.mxu1 %v3081_v8 }
 0xf59   :  { %v1549_v47 = vpop.permute.xlu1 %1548 }
 0xf5a   :  { %v1554_v51 = vsel %vm342_vm7, %v1549_v47, 0 }
 0xf5d   :  { %v1599_v53 = vpop.permute.xlu1 %1598 }
 0xf5e   :  { %v2948_v39 = vpop.eup %2947  ;;  %v1604_v55 = vsel %vm342_vm7, %v1599_v53, 0 }
 0xf5f   :  { %v1438_v40 = vsel %vm342_vm7, %v2948_v39, 0.0 }
 0xf60   :  { %v2950_v41 = vpop.eup %2949  ;;  %1439 = vadd.xlane.f32.xlu0 %v1438_v40 }
 0xf61   :  { %v1441_v42 = vsel %vm342_vm7, %v2950_v41, 0.0  ;;  %v1597_v57 = vpop.permute.xlu1 %1596 }
 0xf64   :  { %1442 = vadd.xlane.f32.xlu0 %v1441_v42 }
 0xf7a   :  { %1498 = vrot.lane.b32.xlu0 %v3451_v9, %s3074_s19 }
 0xf7e   :  { %1546 = vrot.lane.b32.xlu0 %v3449_v6, %s3085_s23 }
 0xfed   :  { %v1440_v43 = vpop.xlane.xlu0 %1439 }
 0xfee   :  { %2951 = vrcp.f32 %v1440_v43 }
 0xff1   :  { %v1443_v44 = vpop.xlane.xlu0 %1442 }
 0xff2   :  { %2953 = vrcp.f32 %v1443_v44 }
 0xff5   :  { %v1499_v31 = vpop.permute.xlu0 %1498 }
 0xff6   :  { %v1504_v45 = vsel %vm471_vm9, %v1499_v31, 0 }
 0xff7   :  { %2769 = vmatpush3.bf16.msra.mxu0 %v1504_v45 }
 0xff8   :  { %v2952_v46 = vpop.eup %2951  ;;  %2780 = vmatprep.subr.bf16.mxu0 %v3081_v8 }
 0xff9   :  { %v1446_v48 = vmul.f32 %v2952_v46, %v2948_v39  ;;  %v1547_v56 = vpop.permute.xlu0 %1546 }
 0xffb   :  { %v1448_v49 = vpack.c.bf16 %v1446_v48, %v1446_v48 }
 0xffc   :  { %v2954_v50 = vpop.eup %2953 }
 0xffd   :  { %v1447_v52 = vmul.f32 %v2954_v50, %v2950_v41  ;;  %2765 = vmatmul.mubr.msk.bf16.vlgmr.msra.gmra.mrb[40].mxu1 %vm342_vm7, %v1448_v49 }
 0xffe   :  { %2775 = vmatpush3.bf16.xpose.msra.mxu1 %v1554_v51  ;;  %2776 = vmatprep.mubr.msk.bf16.mxu1 %vm3082_vm5, %v3081_v8 }
 0xfff   :  { %v1449_v54 = vpack.c.bf16 %v1447_v52, %v1447_v52  ;;  %2786 = vmatprep.subr.bf16.mxu1 %v3081_v8 }
0x1001   :  { %2771 = vmatmul.mubr.msk.bf16.vlgmr.msra.gmra.mrb[44].mxu0 %vm342_vm7, %v1449_v54 }
0x1002   :  { %2781 = vmatpush3.bf16.xpose.msra.mxu0 %v1604_v55  ;;  %2782 = vmatprep.mubr.msk.bf16.mxu0 %vm3082_vm5, %v3081_v8 }
0x1003   :  { %2792 = vmatprep.subr.bf16.mxu0 %v3081_v8 }
0x1005   :  { %2777 = vmatmul.mubr.msk.bf16.vlgmr.msra.gmra.mrb[44].mxu1 %vm342_vm7, %v1547_v56 }
0x1006   :  { %2788 = vmatprep.mubr.msk.bf16.mxu1 %vm3082_vm5, %v3081_v8 }
0x1009   :  { %2783 = vmatmul.mubr.msk.bf16.vlgmr.msra.gmra.mrb[48].mxu0 %vm342_vm7, %v1597_v57 }
0x100a   :  { %2794 = vmatprep.mubr.msk.bf16.mxu0 %vm3082_vm5, %v3081_v8 }
0x10d0   :  { %v3509_v58 = vpop.f32.mrb[40].mxu1 }
0x10d1   :  { %v2766_v59 = vpop.f32.mrb[41].mxu1 }
0x10d2   :  { %v1495_v60 = vpop.f32.mrb[42].mxu1 }
0x10d3   :  { %v2767_v61 = vpop.f32.mrb[43].mxu1 }
0x10d4   :  { %v3511_v62 = vpop.f32.mrb[44].mxu0 }
0x10d5   :  { %v2772_v0 = vpop.f32.mrb[45].mxu0 }
0x10d6   :  { %v1543_v1 = vpop.f32.mrb[46].mxu0 }
0x10d7   :  { %v2773_v2 = vpop.f32.mrb[47].mxu0 }
0x10d8   :  { %v1590_v3 = vpop.f32.mrb[44].mxu1 }
0x10d9   :  { %v1646_v16 = vsel %vm3260_vm8, %v1590_v3, -1e+10  ;;  %v2778_v25 = vpop.f32.mrb[45].mxu1 }
0x10da   :  { %v1593_v20 = vpop.f32.mrb[46].mxu1  ;;  %v1648_v7 = vsel %vm342_vm7, %v1646_v16, -inf }
0x10db   :  { %1649 = vmax.xlane.f32.xlu0 %v1648_v7  ;;  %v2779_v24 = vpop.f32.mrb[47].mxu1 }
0x10dc   :  { %v1640_v11 = vpop.f32.mrb[48].mxu0 }
0x10dd   :  { %v1647_v12 = vsel %vm3260_vm8, %v1640_v11, -1e+10  ;;  %v2784_v13 = vpop.f32.mrb[49].mxu0 }
0x10de   :  { %v1643_v14 = vpop.f32.mrb[50].mxu0  ;;  %v1651_v15 = vsel %vm342_vm7, %v1647_v12, -inf }
0x10df   :  { %1652 = vmax.xlane.f32.xlu1 %v1651_v15  ;;  %v2785_v17 = vpop.f32.mrb[51].mxu0 }
0x10f0   :  { %1672 = vrot.lane.b32.xlu1 %v3449_v6, %s3086_s25 }
0x10f4   :  { %1770 = vrot.lane.b32.xlu1 %v3449_v6, %s3087_s26 }
0x10f8   :  { %1820 = vrot.lane.b32.xlu1 %v3451_v9, %s3087_s26 }
0x10fc   :  { %1818 = vrot.lane.b32.xlu1 %v3451_v9, %s3088_s27 }
0x1168   :  { %v1650_v18 = vpop.xlane.xlu0 %1649 }
0x1169   :  { %v1654_v19 = vsub.f32 %v1646_v16, %v1650_v18 }
0x116b   :  { %v1656_v21 = vmul.f32 1.442695, %v1654_v19 }
0x116c   :  { %v1653_v22 = vpop.xlane.xlu1 %1652 }
0x116d   :  { %2955 = vpow2.f32 %v1656_v21  ;;  %v1655_v23 = vsub.f32 %v1647_v12, %v1653_v22 }
0x116f   :  { %v1658_v26 = vmul.f32 1.442695, %v1655_v23 }
0x1170   :  { %v1673_v27 = vpop.permute.xlu1 %1672 }
0x1171   :  { %2957 = vpow2.f32 %v1658_v26  ;;  %v1678_v29 = vsel %vm471_vm9, %v1673_v27, 0 }
0x1172   :  { %2787 = vmatpush3.bf16.msra.mxu1 %v1678_v29 }
0x1173   :  { %2798 = vmatprep.subr.bf16.mxu1 %v3081_v8 }
0x1174   :  { %v1771_v37 = vpop.permute.xlu1 %1770 }
0x1175   :  { %v1776_v42 = vsel %vm342_vm7, %v1771_v37, 0 }
0x1177   :  { %v2956_v30 = vpop.eup %2955 }
0x1178   :  { %v1660_v32 = vsel %vm342_vm7, %v2956_v30, 0.0  ;;  %v1821_v44 = vpop.permute.xlu1 %1820 }
0x1179   :  { %1661 = vadd.xlane.f32.xlu0 %v1660_v32  ;;  %v1826_v45 = vsel %vm342_vm7, %v1821_v44, 0 }
0x117b   :  { %v2958_v28 = vpop.eup %2957 }
0x117c   :  { %v1663_v5 = vsel %vm342_vm7, %v2958_v28, 0.0  ;;  %v1819_v47 = vpop.permute.xlu1 %1818 }
0x117d   :  { %1664 = vadd.xlane.f32.xlu0 %v1663_v5 }
0x1193   :  { %1720 = vrot.lane.b32.xlu0 %v3451_v9, %s3086_s25 }
0x1197   :  { %1768 = vrot.lane.b32.xlu0 %v3449_v6, %s3088_s27 }
0x1206   :  { %v1662_v10 = vpop.xlane.xlu0 %1661 }
0x1207   :  { %2959 = vrcp.f32 %v1662_v10 }
0x120a   :  { %v1665_v33 = vpop.xlane.xlu0 %1664 }
0x120b   :  { %2961 = vrcp.f32 %v1665_v33 }
0x120e   :  { %v1721_v34 = vpop.permute.xlu0 %1720 }
0x120f   :  { %v1726_v35 = vsel %vm471_vm9, %v1721_v34, 0 }
0x1210   :  { %2793 = vmatpush3.bf16.msra.mxu0 %v1726_v35 }
0x1211   :  { %v2960_v36 = vpop.eup %2959  ;;  %2804 = vmatprep.subr.bf16.mxu0 %v3081_v8 }
0x1212   :  { %v1668_v39 = vmul.f32 %v2960_v36, %v2956_v30  ;;  %v1769_v46 = vpop.permute.xlu0 %1768 }
0x1214   :  { %v1670_v40 = vpack.c.bf16 %v1668_v39, %v1668_v39 }
0x1215   :  { %v2962_v41 = vpop.eup %2961 }
0x1216   :  { %v1669_v43 = vmul.f32 %v2962_v41, %v2958_v28  ;;  %2789 = vmatmul.mubr.msk.bf16.vlgmr.msra.gmra.mrb[48].mxu1 %vm342_vm7, %v1670_v40 }
0x1217   :  { %2799 = vmatpush3.bf16.xpose.msra.mxu1 %v1776_v42  ;;  %2800 = vmatprep.mubr.msk.bf16.mxu1 %vm3082_vm5, %v3081_v8 }
0x1218   :  { %v1671_v31 = vpack.c.bf16 %v1669_v43, %v1669_v43  ;;  %2810 = vmatprep.subr.bf16.mxu1 %v3081_v8 }
0x121a   :  { %2795 = vmatmul.mubr.msk.bf16.vlgmr.msra.gmra.mrb[52].mxu0 %vm342_vm7, %v1671_v31 }
0x121b   :  { %2805 = vmatpush3.bf16.xpose.msra.mxu0 %v1826_v45  ;;  %2806 = vmatprep.mubr.msk.bf16.mxu0 %vm3082_vm5, %v3081_v8 }
0x121c   :  { %2816 = vmatprep.subr.bf16.mxu0 %v3081_v8 }
0x121e   :  { %2801 = vmatmul.mubr.msk.bf16.vlgmr.msra.gmra.mrb[52].mxu1 %vm342_vm7, %v1769_v46 }
0x121f   :  { %2812 = vmatprep.mubr.msk.bf16.mxu1 %vm3082_vm5, %v3081_v8 }
0x1222   :  { %2807 = vmatmul.mubr.msk.bf16.vlgmr.msra.gmra.mrb[56].mxu0 %vm342_vm7, %v1819_v47 }
0x1223   :  { %2818 = vmatprep.mubr.msk.bf16.mxu0 %vm3082_vm5, %v3081_v8 }
0x12e9   :  { %v3553_v48 = vpop.f32.mrb[48].mxu1 }
0x12ea   :  { %v2790_v49 = vpop.f32.mrb[49].mxu1 }
0x12eb   :  { %v1717_v50 = vpop.f32.mrb[50].mxu1 }
0x12ec   :  { %v2791_v51 = vpop.f32.mrb[51].mxu1 }
0x12ed   :  { %v3555_v52 = vpop.f32.mrb[52].mxu0 }
0x12ee   :  { %v2796_v53 = vpop.f32.mrb[53].mxu0 }
0x12ef   :  { %v1765_v54 = vpop.f32.mrb[54].mxu0 }
0x12f0   :  { %v2797_v55 = vpop.f32.mrb[55].mxu0 }
0x12f1   :  { %v1812_v56 = vpop.f32.mrb[52].mxu1 }
0x12f2   :  { %v1868_v57 = vsel %vm3260_vm8, %v1812_v56, -1e+10  ;;  %v2802_v59 = vpop.f32.mrb[53].mxu1 }
0x12f3   :  { %v1815_v60 = vpop.f32.mrb[54].mxu1  ;;  %v1870_v61 = vsel %vm342_vm7, %v1868_v57, -inf }
0x12f4   :  { %1871 = vmax.xlane.f32.xlu0 %v1870_v61  ;;  %v2803_v0 = vpop.f32.mrb[55].mxu1 }
0x12f5   :  { %v1862_v1 = vpop.f32.mrb[56].mxu0 }
0x12f6   :  { %v1869_v2 = vsel %vm3260_vm8, %v1862_v1, -1e+10  ;;  %v2808_v3 = vpop.f32.mrb[57].mxu0 }
0x12f7   :  { %v1865_v16 = vpop.f32.mrb[58].mxu0  ;;  %v1873_v25 = vsel %vm342_vm7, %v1869_v2, -inf }
0x12f8   :  { %1874 = vmax.xlane.f32.xlu1 %v1873_v25  ;;  %v2809_v20 = vpop.f32.mrb[59].mxu0 }
0x1309   :  { %1894 = vrot.lane.b32.xlu1 %v3449_v6, %s3089_s3 }
0x130d   :  { %1992 = vrot.lane.b32.xlu1 %v3449_v6, %s3090_s24 }
0x1311   :  { %2042 = vrot.lane.b32.xlu1 %v3451_v9, %s3090_s24 }
0x1315   :  { %2040 = vrot.lane.b32.xlu1 %v3451_v9, %s3091_s28 }
0x1381   :  { %v1872_v7 = vpop.xlane.xlu0 %1871 }
0x1382   :  { %v1876_v24 = vsub.f32 %v1868_v57, %v1872_v7 }
0x1384   :  { %v1878_v11 = vmul.f32 1.442695, %v1876_v24 }
0x1385   :  { %v1875_v12 = vpop.xlane.xlu1 %1874 }
0x1386   :  { %2963 = vpow2.f32 %v1878_v11  ;;  %v1877_v13 = vsub.f32 %v1869_v2, %v1875_v12 }
0x1388   :  { %v1880_v14 = vmul.f32 1.442695, %v1877_v13 }
0x1389   :  { %v1895_v15 = vpop.permute.xlu1 %1894 }
0x138a   :  { %2965 = vpow2.f32 %v1880_v14  ;;  %v1900_v17 = vsel %vm471_vm9, %v1895_v15, 0 }
0x138b   :  { %2811 = vmatpush3.bf16.msra.mxu1 %v1900_v17 }
0x138c   :  { %2822 = vmatprep.subr.bf16.mxu1 %v3081_v8 }
0x138d   :  { %v1993_v32 = vpop.permute.xlu1 %1992 }
0x138e   :  { %v1998_v33 = vsel %vm342_vm7, %v1993_v32, 0 }
0x1390   :  { %v2964_v18 = vpop.eup %2963 }
0x1391   :  { %v1882_v19 = vsel %vm342_vm7, %v2964_v18, 0.0  ;;  %v2043_v35 = vpop.permute.xlu1 %2042 }
0x1392   :  { %1883 = vadd.xlane.f32.xlu0 %v1882_v19  ;;  %v2048_v37 = vsel %vm342_vm7, %v2043_v35, 0 }
0x1394   :  { %v2966_v21 = vpop.eup %2965 }
0x1395   :  { %v1885_v22 = vsel %vm342_vm7, %v2966_v21, 0.0  ;;  %v2041_v40 = vpop.permute.xlu1 %2040 }
0x1396   :  { %1886 = vadd.xlane.f32.xlu0 %v1885_v22  ;;  %v2909_v22 = vld [vmem:[#allocation5] sm:$0xff]  }
0x13ac   :  { %1942 = vrot.lane.b32.xlu0 %v3451_v9, %s3089_s3 }
0x13b0   :  { %1990 = vrot.lane.b32.xlu0 %v3449_v6, %s3091_s28 }
0x141f   :  { %v1884_v23 = vpop.xlane.xlu0 %1883 }
0x1420   :  { %2967 = vrcp.f32 %v1884_v23  ;;  %v2910_v23 = vld [vmem:[#allocation5 + $0x8] sm:$0xff]  }
0x1423   :  { %v1887_v26 = vpop.xlane.xlu0 %1886 }
0x1424   :  { %2969 = vrcp.f32 %v1887_v26 }
0x1427   :  { %v1943_v27 = vpop.permute.xlu0 %1942 }
0x1428   :  { %v1948_v29 = vsel %vm471_vm9, %v1943_v27, 0 }
0x1429   :  { %2817 = vmatpush3.bf16.msra.mxu0 %v1948_v29 }
0x142a   :  { %v2968_v30 = vpop.eup %2967  ;;  %2828 = vmatprep.subr.bf16.mxu0 %v3081_v8 }
0x142b   :  { %v1890_v28 = vmul.f32 %v2968_v30, %v2964_v18  ;;  %v1991_v39 = vpop.permute.xlu0 %1990 }
0x142d   :  { %v1892_v5 = vpack.c.bf16 %v1890_v28, %v1890_v28 }
0x142e   :  { %v2970_v10 = vpop.eup %2969 }
0x142f   :  { %v1891_v34 = vmul.f32 %v2970_v10, %v2966_v21  ;;  %2813 = vmatmul.mubr.msk.bf16.vlgmr.msra.gmra.mrb[56].mxu1 %vm342_vm7, %v1892_v5 }
0x1430   :  { %2823 = vmatpush3.bf16.xpose.msra.mxu1 %v1998_v33  ;;  %2824 = vmatprep.mubr.msk.bf16.mxu1 %vm3082_vm5, %v3081_v8 }
0x1431   :  { %v1893_v36 = vpack.c.bf16 %v1891_v34, %v1891_v34  ;;  %2834 = vmatprep.subr.bf16.mxu1 %v3081_v8 }
0x1433   :  { %2819 = vmatmul.mubr.msk.bf16.vlgmr.msra.gmra.mrb[60].mxu0 %vm342_vm7, %v1893_v36 }
0x1434   :  { %2829 = vmatpush3.bf16.xpose.msra.mxu0 %v2048_v37  ;;  %2830 = vmatprep.mubr.msk.bf16.mxu0 %vm3082_vm5, %v3081_v8 }
0x1435   :  { %2840 = vmatprep.subr.bf16.mxu0 %v3081_v8 }
0x1437   :  { %2825 = vmatmul.mubr.msk.bf16.vlgmr.msra.gmra.mrb[60].mxu1 %vm342_vm7, %v1991_v39 }
0x1438   :  { %2836 = vmatprep.mubr.msk.bf16.mxu1 %vm3082_vm5, %v3081_v8 }
0x143b   :  { %2831 = vmatmul.mubr.msk.bf16.vlgmr.msra.gmra.mrb[64].mxu0 %vm342_vm7, %v2041_v40 }
0x143c   :  { %2842 = vmatprep.mubr.msk.bf16.mxu0 %vm3082_vm5, %v3081_v8 }
0x1502   :  { %v1936_v41 = vpop.f32.mrb[56].mxu1 }
0x1503   :  { %v2814_v42 = vpop.f32.mrb[57].mxu1 }
0x1504   :  { %v1939_v43 = vpop.f32.mrb[58].mxu1 }
0x1505   :  { %v2815_v44 = vpop.f32.mrb[59].mxu1 }
0x1506   :  { %v1984_v31 = vpop.f32.mrb[60].mxu0 }
0x1507   :  { %v2820_v45 = vpop.f32.mrb[61].mxu0 }
0x1508   :  { %v1987_v46 = vpop.f32.mrb[62].mxu0 }
0x1509   :  { %v2821_v47 = vpop.f32.mrb[63].mxu0 }
0x150a   :  { %v2034_v49 = vpop.f32.mrb[60].mxu1 }
0x150b   :  { %v2090_v50 = vsel %vm3260_vm8, %v2034_v49, -1e+10  ;;  %v2826_v51 = vpop.f32.mrb[61].mxu1  ;;  %v2524_v49 = vld [vmem:[%s3676_s6] ss:$0 sm:$0xff] }
0x150c   :  { %v2037_v53 = vpop.f32.mrb[62].mxu1  ;;  %v2092_v54 = vsel %vm342_vm7, %v2090_v50, -inf }
0x150d   :  { %2093 = vmax.xlane.f32.xlu0 %v2092_v54  ;;  %v2827_v55 = vpop.f32.mrb[63].mxu1 }
0x150e   :  { %v2084_v56 = vpop.f32.mrb[64].mxu0 }
0x150f   :  { %v2091_v57 = vsel %vm3260_vm8, %v2084_v56, -1e+10  ;;  %v2832_v59 = vpop.f32.mrb[65].mxu0 }
0x1510   :  { %v2087_v60 = vpop.f32.mrb[66].mxu0  ;;  %v2095_v61 = vsel %vm342_vm7, %v2091_v57, -inf  ;;  %v2913_v59 = vld [vmem:[#allocation7] sm:$0xff]  }
0x1511   :  { %2096 = vmax.xlane.f32.xlu1 %v2095_v61  ;;  %v2833_v0 = vpop.f32.mrb[67].mxu0  ;;  %v2914_v60 = vld [vmem:[#allocation7 + $0x8] sm:$0xff]  }
0x1512   :  { %v2529_v61 = vld [vmem:[%s3676_s6 + $0x1] ss:$0 sm:$0xff]  ;;  %s3045_s6 = scalar_lea.vmem %s2462_s0, 256 }
0x1513   :  { %p3046_p10 = scmp.ne.s32.totalorder %s2462_s0, %s3045_s6  ;;  %p3051_p12 = scmp.lt.s32.totalorder %s3045_s6, %s3045_s6 }
0x1515   :  { %p3052_p13 = por %p3051_p12, %p3050_p11 }
0x1517   :  { %p3053_p0 = pnand %p3052_p13, %p3046_p10 }
0x1522   :  { %2116 = vrot.lane.b32.xlu1 %v3449_v6, %s3092_s29 }
0x1526   :  { %2214 = vrot.lane.b32.xlu1 %v3553_v48, %s3078_s10 }
0x152a   :  { %2216 = vrot.lane.b32.xlu1 %v3555_v52, %s3078_s10 }
0x152e   :  { %2224 = vrot.lane.b32.xlu1 %v1984_v31, %s3093_s30 }
0x159a   :  { %v2094_v1 = vpop.xlane.xlu0 %2093 }
0x159b   :  { %v2098_v38 = vsub.f32 %v2090_v50, %v2094_v1 }
0x159d   :  { %v2100_v2 = vmul.f32 1.442695, %v2098_v38 }
0x159e   :  { %v2097_v3 = vpop.xlane.xlu1 %2096 }
0x159f   :  { %2971 = vpow2.f32 %v2100_v2  ;;  %v2099_v16 = vsub.f32 %v2091_v57, %v2097_v3 }
0x15a1   :  { %v2102_v25 = vmul.f32 1.442695, %v2099_v16 }
0x15a2   :  { %v2117_v20 = vpop.permute.xlu1 %2116 }
0x15a3   :  { %2973 = vpow2.f32 %v2102_v25  ;;  %v2122_v7 = vsel %vm471_vm9, %v2117_v20, 0 }
0x15a4   :  { %2835 = vmatpush3.bf16.msra.mxu1 %v2122_v7 }
0x15a5   :  { %2846 = vmatprep.subr.bf16.mxu1 %v3081_v8 }
0x15a6   :  { %v2215_v33 = vpop.permute.xlu1 %2214 }
0x15a7   :  { %v2236_v39 = vsel %vm342_vm7, %v3509_v58, %v2215_v33  ;;  %v2911_v58 = vld [vmem:[#allocation5 + $0x10] sm:$0xff]  }
0x15a9   :  { %v2972_v6 = vpop.eup %2971 }
0x15aa   :  { %v2104_v48 = vsel %vm342_vm7, %v2972_v6, 0.0  ;;  %v2217_v34 = vpop.permute.xlu1 %2216 }
0x15ab   :  { %2105 = vadd.xlane.f32.xlu0 %v2104_v48 }
0x15ad   :  { %v2974_v52 = vpop.eup %2973 }
0x15ae   :  { %v2107_v24 = vsel %vm342_vm7, %v2974_v52, 0.0  ;;  %v2225_v36 = vpop.permute.xlu1 %2224 }
0x15af   :  { %2108 = vadd.xlane.f32.xlu0 %v2107_v24 }
0x15c5   :  { %2164 = vrot.lane.b32.xlu0 %v3451_v9, %s3092_s29 }
0x15c9   :  { %2222 = vrot.lane.b32.xlu0 %v1936_v41, %s3093_s30  ;;  %v2237_v41 = vsel %vm342_vm7, %v3511_v62, %v2217_v34  ;;  %v2912_v62 = vld [vmem:[#allocation5 + $0x18] sm:$0xff]  }
0x15ca   :  { %v2239_v43 = vsel %vm109_vm0, %v2237_v41, %v2225_v36 }
0x1638   :  { %v2106_v11 = vpop.xlane.xlu0 %2105 }
0x1639   :  { %2975 = vrcp.f32 %v2106_v11 }
0x163c   :  { %v2109_v12 = vpop.xlane.xlu0 %2108 }
0x163d   :  { %2977 = vrcp.f32 %v2109_v12 }
0x1640   :  { %v2165_v13 = vpop.permute.xlu0 %2164 }
0x1641   :  { %v2170_v14 = vsel %vm471_vm9, %v2165_v13, 0 }
0x1642   :  { %2841 = vmatpush3.bf16.msra.mxu0 %v2170_v14 }
0x1643   :  { %v2976_v15 = vpop.eup %2975  ;;  %2854 = vmatprep.subr.bf16.mxu0 %v3081_v8 }
0x1644   :  { %v2112_v17 = vmul.f32 %v2976_v15, %v2972_v6  ;;  %v2223_v35 = vpop.permute.xlu0 %2222 }
0x1645   :  { %v2238_v40 = vsel %vm109_vm0, %v2236_v39, %v2223_v35 }
0x1646   :  { %v2114_v18 = vpack.c.bf16 %v2112_v17, %v2112_v17 }
0x1647   :  { %v2978_v19 = vpop.eup %2977 }
0x1648   :  { %v2113_v21 = vmul.f32 %v2978_v19, %v2974_v52  ;;  %2837 = vmatmul.mubr.msk.bf16.vlgmr.msra.gmra.mrb[64].mxu1 %vm342_vm7, %v2114_v18 }
0x1649   :  { %2850 = vmatprep.mubr.msk.bf16.mxu1 %vm3082_vm5, %v3081_v8  ;;  %2847 = vmatpush3.bf16.msra.mxu1 %v2909_v22 }
0x164a   :  { %v2115_v9 = vpack.c.bf16 %v2113_v21, %v2113_v21  ;;  %2848 = vmatprep.subr.bf16.mxu1 %v3081_v8 }
0x164c   :  { %2843 = vmatmul.mubr.msk.bf16.vlgmr.msra.gmra.mrb[68].mxu0 %vm342_vm7, %v2115_v9 }
0x164d   :  { %2858 = vmatprep.mubr.msk.bf16.mxu0 %vm3082_vm5, %v3081_v8  ;;  %2849 = vmatpush3.bf16.msra.mxu1 %v2910_v23 }
0x164e   :  { %2862 = vmatprep.subr.bf16.mxu1 %v3081_v8  ;;  %2855 = vmatpush3.bf16.msra.mxu0 %v2911_v58 }
0x164f   :  { %2856 = vmatprep.subr.bf16.mxu0 %v3081_v8 }
0x1652   :  { %2857 = vmatpush3.bf16.msra.mxu0 %v2912_v62 }
0x171b   :  { %v2158_v26 = vpop.f32.mrb[64].mxu1 }
0x171c   :  { %2230 = vrot.lane.b32.xlu0 %v2158_v26, %s3094_s20  ;;  %v2838_v27 = vpop.f32.mrb[65].mxu1 }
0x171d   :  { %v2161_v29 = vpop.f32.mrb[66].mxu1 }
0x171e   :  { %v2839_v30 = vpop.f32.mrb[67].mxu1 }
0x171f   :  { %v2206_v32 = vpop.f32.mrb[68].mxu0 }
0x1720   :  { %2232 = vrot.lane.b32.xlu1 %v2206_v32, %s3094_s20  ;;  %v2844_v28 = vpop.f32.mrb[69].mxu0 }
0x1721   :  { %v2209_v5 = vpop.f32.mrb[70].mxu0 }
0x1722   :  { %v2845_v10 = vpop.f32.mrb[71].mxu0 }
0x178e   :  { %v2231_v37 = vpop.permute.xlu0 %2230 }
0x178f   :  { %v2240_v42 = vsel %vm1257_vm10, %v2238_v40, %v2231_v37 }
0x1790   :  { %v2242_v45 = vadd.f32 %v2240_v42, %v3435_v63 }
0x1792   :  { %v2233_v44 = vpop.permute.xlu1 %2232 }
0x1793   :  { %v2241_v31 = vsel %vm1257_vm10, %v2239_v43, %v2233_v44 }
0x1794   :  { %v2243_v46 = vadd.f32 %v2241_v31, %v3442_v4 }
0x1796   :  { %v2244_v47 = vpack.c.bf16 %v2243_v46, %v2242_v45 }
0x1798   :  { %2851 = vmatmul.mubr.msk.bf16.vlgmr.msra.gmra.mrb[68].mxu1 %vm292_vm6, %v2244_v47 }
0x1799   :  { %2866 = vmatprep.mubr.msk.bf16.mxu1 %vm3082_vm5, %v3081_v8  ;;  %2863 = vmatpush3.bf16.msra.mxu1 %v2913_v59 }
0x179a   :  { %2864 = vmatprep.subr.bf16.mxu1 %v3081_v8  ;;  %v2533_v8 = vld [vmem:[%s3678_s8] ss:$0 sm:$0xff] }
0x179d   :  { %2865 = vmatpush3.bf16.msra.mxu1 %v2914_v60 }
0x186b   :  { %v2305_v50 = vpop.f32.mrb[68].mxu1 }
0x186c   :  { %v2306_v63 = vadd.f32 %v2524_v49, %v2305_v50  ;;  %v2852_v51 = vpop.f32.mrb[69].mxu1 }
0x186d   :  { %v2308_v4 = vpop.f32.mrb[70].mxu1 }
0x186e   :  { %v2309_v53 = vadd.f32 %v2524_v49, %v2308_v4  ;;  %v2853_v54 = vpop.f32.mrb[71].mxu1  ;;  %v2312_v55 = vmax.f32 %v2306_v63, 0.0 }
0x1870   :  { %v2313_v56 = vmax.f32 %v2309_v53, 0.0 }
0x1872   :  { %v2314_v57 = vpack.c.bf16 %v2313_v56, %v2312_v55 }
0x1874   :  { %2859 = vmatmul.mubr.msk.bf16.vlgmr.msra.gmra.mrb[72].mxu0 %vm292_vm6, %v2314_v57 }
0x1947   :  { %v2377_v0 = vpop.f32.mrb[72].mxu0 }
0x1948   :  { %v2378_v1 = vadd.f32 %v2529_v61, %v2377_v0  ;;  %v2860_v38 = vpop.f32.mrb[73].mxu0 }
0x1949   :  { %v2380_v2 = vpop.f32.mrb[74].mxu0 }
0x194a   :  { %v2381_v3 = vadd.f32 %v2529_v61, %v2380_v2  ;;  %v2861_v16 = vpop.f32.mrb[75].mxu0  ;;  %v2384_v25 = vmax.f32 %v2378_v1, 0.0 }
0x194c   :  { %v2385_v20 = vmax.f32 %v2381_v3, 0.0 }
0x194e   :  { %v2386_v7 = vpack.c.bf16 %v2385_v20, %v2384_v25 }
0x1950   :  { %2867 = vmatmul.mubr.msk.bf16.vlgmr.msra.gmra.mrb[72].mxu1 %vm292_vm6, %v2386_v7 }
0x1a23   :  { %v2447_v6 = vpop.f32.mrb[72].mxu1 }
0x1a24   :  { %v2448_v48 = vadd.f32 %v2533_v8, %v2447_v6  ;;  %v2868_v52 = vpop.f32.mrb[73].mxu1 }
0x1a25   :  { %v2450_v24 = vpop.f32.mrb[74].mxu1 }
0x1a26   :  { %2454 = vst [vmem:[#allocation8] sm:$0xff] %v2448_v48  ;;  %v2451_v11 = vadd.f32 %v2533_v8, %v2450_v24  ;;  %v2869_v12 = vpop.f32.mrb[75].mxu1 }
0x1a28   :  { %2455 = vst [vmem:[#allocation8 + $0x8] sm:$0xff] %v2451_v11 }
0x1a29   :  { %3056 = shalt.err (!%p3053_p0)
}
0x1a2a   :  { %s3057_s18 = scalar_lea.hbm %s3679_s9, 256 }
0x1a2b   :  { %p3058_p1 = scmp.ne.s32.totalorder %s3679_s9, %s3057_s18  ;;  %p3061_p2 = scmp.lt.u32.totalorder %s3057_s18, %s3679_s9 }
0x1a2d   :  { %p3063_p3 = pnand %p3061_p2, %p3058_p1 }
0x1a2f   :  { %3066 = shalt.err (!%p3063_p3)
}
0x1a30   :  { %2467 = dma.vmem_to_hbm [thread:$0]  %s2462_s0, 256, %s3679_s9, [#allocation4], %s3077_s5, %s3077_s5, %s3078_s10  }
0x1a31   :  { %3071 = dma.done.wait [#allocation4], 256  }
0x1a32   :  { %3072 = vsyncadd [#allocation4], 4294967040 }
0x1a33   :  { %2471 = vsyncpa [#allocation3], 1 }
0x1a34   :  { %2472 = vsyncpa [#allocation6], 1 }
0x1a35   :  { %2473 = vsyncpa [#allocation4], 1 }

</bundles_post_ra>
